<compile_context>
chip_gen: v6e
topology: v6e:2x2x1
jax: 0.10.0
libtpu: 0.0.40
codegen_flags: <defaults>
</compile_context>

<pallas_src>
import functools

import jax
import jax.numpy as jnp
from jax import lax
from jax.experimental import pallas as pl
from jax.experimental.pallas import tpu as pltpu


# ----------------------------- weight construction -----------------------------

def make_divisible(v, divisor, min_value=None):
    if min_value is None:
        min_value = divisor
    new_v = max(min_value, int(v + divisor / 2) // divisor * divisor)
    if new_v < 0.9 * v:
        new_v += divisor
    return new_v


def get_3x3_gaussian_weight2d(sigma):
    # TODO(synk): original helper definition not provided; standard normalized gaussian used.
    ax = jnp.array([-1.0, 0.0, 1.0], dtype=jnp.float32)
    yy, xx = jnp.meshgrid(ax, ax, indexing="ij")
    d2 = (xx ** 2 + yy ** 2)[None, :, :]                       # (1,3,3)
    g = jnp.exp(-d2 / (2.0 * (sigma[:, None, None] ** 2)))     # (G,3,3)
    g = g / jnp.sum(g, axis=(1, 2), keepdims=True)
    return g[:, None, :, :]                                    # (G,1,3,3)


def build_semantic_dw_weights(in_channels, ratio=3.0 / 4.0):
    """Deterministic weight construction mirroring the module's `weight` property
    with parameters at their __init__ values (ones, 1/2, 1/4, sigma=1)."""
    f32 = jnp.float32
    i_ = jnp.array([[0, 0, 0], [0, 1, 0], [0, 0, 0]], f32)
    mask_l4 = jnp.array([[0, 1, 0], [1, 0, 1], [0, 1, 0]], f32) / 4.0
    mask_l8 = jnp.array([[1, 1, 1], [1, 0, 1], [1, 1, 1]], f32) / 8.0
    sx = jnp.array([[0, 0, 0], [-1, 0, 1], [0, 0, 0]], f32)
    mask_sx = jnp.array([[-1, 0, 1], [0, 0, 0], [-1, 0, 1]], f32) / 4.0
    sy = jnp.array([[0, -1, 0], [0, 0, 0], [0, 1, 0]], f32)
    mask_sy = jnp.array([[-1, 0, -1], [0, 0, 0], [1, 0, 1]], f32) / 4.0
    rx = jnp.array([[-1, 0, 0], [0, 0, 0], [0, 0, 1]], f32)
    ry = jnp.array([[0, 0, 1], [0, 0, 0], [-1, 0, 0]], f32)
    mask_rx = jnp.array([[0, -1, 0], [-1, 0, 1], [0, 1, 0]], f32) / 2.0
    mask_ry = jnp.array([[0, 1, 0], [-1, 0, 1], [0, -1, 0]], f32) / 2.0

    edge_chs = make_divisible(in_channels * ratio, 6, 6)
    if edge_chs > in_channels:
        edge_chs -= 6
    gaussian_chs = in_channels - edge_chs

    kernels = []
    if edge_chs != 0:
        g6 = edge_chs // 6
        l4 = jnp.ones((g6, 1, 1), f32)
        l8 = jnp.ones((g6, 1, 1), f32)
        sobel = jnp.ones((g6, 1, 1), f32) / 2.0
        roberts = jnp.ones((g6, 1, 1), f32) / 4.0
        kernels.append((l4 * i_ - mask_l4)[:, None])
        kernels.append((l8 * i_ - mask_l8)[:, None])
        kernels.append((sobel * sx + mask_sx)[:, None])
        kernels.append((sobel * sy + mask_sy)[:, None])
        kernels.append((roberts * rx + mask_rx)[:, None])
        kernels.append((roberts * ry + mask_ry)[:, None])
    if gaussian_chs != 0:
        sigma = jnp.ones((gaussian_chs,), f32)
        kernels.append(get_3x3_gaussian_weight2d(sigma))
    return jnp.concatenate(kernels, axis=0)  # (C, 1, 3, 3)


# ----------------------------- Pallas kernel -----------------------------

def _dw3x3_nhwc_kernel(x_ref, w_ref, o_ref, xpad_ref, *, dilation, w_off):
    # x_ref : (1, H, W, TC)  NHWC block, channels on the 128-wide lane axis
    # w_ref : (9, TC)        per-channel taps, row k = kh*3 + kw (lane vectors)
    # o_ref : (1, H, W, TC)  stride-1 "same" output block
    # xpad  : (H + 2*pad, w_off + W + pad, TC) zero-padded VMEM staging buffer
    _, H, W, TC = x_ref.shape
    pad = dilation

    # In-kernel halo (replaces the HBM jnp.pad pre-pass): zero the staging
    # buffer, then drop the block at a sublane-aligned column offset (w_off is
    # a multiple of 8), so the only non-trivial store is fully aligned.
    xpad_ref[...] = jnp.zeros_like(xpad_ref)
    xpad_ref[pad:pad + H, w_off:w_off + W, :] = x_ref[0]

    acc = jnp.zeros((H, W, TC), jnp.float32)
    for kh in range(3):
        for kw in range(3):
            k = kh * 3 + kw
            wk = w_ref[k].astype(jnp.float32)            # (TC,) lane vector
            h0 = kh * dilation                           # major-dim offset
            w0 = w_off + (kw - 1) * dilation             # sublane offset
            tap = xpad_ref[h0:h0 + H, w0:w0 + W, :]      # contiguous read, no lane shift
            acc = acc + wk * tap.astype(jnp.float32)     # lane-aligned broadcast MAC
    o_ref[0] = acc.astype(o_ref.dtype)


def _pick_channel_tile(C, H, W, itemsize):
    # Lane-axis tile must be full C or a multiple of 128 (Mosaic (8,128) rule).
    if C % 128 != 0:
        return C
    budget = 8 * 1024 * 1024     # ~5 live block-sized buffers per grid step
    for tc in (1024, 512, 256, 128):
        if C % tc == 0 and 5 * H * W * tc * itemsize <= budget:
            return tc
    return 128


def semantic_depthwise_conv2d(x, weight, *, stride=1, dilation=1):
    """x: (N, C, H, W); weight: (C, 1, 3, 3). Depthwise (groups=C) 3x3 conv,
    padding = dilation, no bias — matches the module's forward (NCHW in/out)."""
    N, C, H, W = x.shape
    pad = dilation
    w_off = ((pad + 7) // 8) * 8          # sublane-aligned left halo in staging buffer

    # Channels-last so C fills the lane axis; layout plumbing stays in the wrapper.
    x_nhwc = jnp.transpose(x, (0, 2, 3, 1))                      # (N, H, W, C)
    w9c = jnp.transpose(weight.reshape(C, 9), (1, 0)).astype(jnp.float32)  # (9, C)

    TC = _pick_channel_tile(C, H, W, x.dtype.itemsize)
    kernel = functools.partial(_dw3x3_nhwc_kernel, dilation=dilation, w_off=w_off)

    # TODO(synk): very large H*W with huge C would additionally want spatial
    # (H-row) tiling with halo exchange; grid here tiles batch and channels only.
    out_s1 = pl.pallas_call(
        kernel,
        out_shape=jax.ShapeDtypeStruct((N, H, W, C), x.dtype),
        grid_spec=pltpu.PrefetchScalarGridSpec(
            num_scalar_prefetch=0,
            grid=(N, C // TC),
            in_specs=[
                pl.BlockSpec((1, H, W, TC), lambda n, c: (n, 0, 0, c)),
                pl.BlockSpec((9, TC), lambda n, c: (0, c)),
            ],
            out_specs=pl.BlockSpec((1, H, W, TC), lambda n, c: (n, 0, 0, c)),
            scratch_shapes=[pltpu.VMEM((H + 2 * pad, w_off + W + pad, TC), x.dtype)],
        ),
        compiler_params=pltpu.CompilerParams(
            dimension_semantics=("parallel", "parallel"),
            vmem_limit_bytes=48 * 1024 * 1024,
        ),
    )(x_nhwc, w9c)

    if stride > 1:
        # padding == dilation -> stride-1 result is "same"-sized; the strided conv
        # is exactly its subsampling.
        # TODO(synk): stride>1 subsamples outside the kernel (extra HBM writeback
        # of the stride-1 map); fold into the kernel if that path becomes hot.
        out_s1 = out_s1[:, ::stride, ::stride, :]
    return jnp.transpose(out_s1, (0, 3, 1, 2))                   # back to NCHW


# ----------------------------- demo / check -----------------------------

if __name__ == "__main__":
    key = jax.random.PRNGKey(0)
    N, C, H, W = 2, 64, 16, 16   # C=64 -> edge_chs=48, gaussian_chs=16 (both paths exercised)
    x = jax.random.normal(key, (N, C, H, W), dtype=jnp.float32)
    weight = build_semantic_dw_weights(C, ratio=3.0 / 4.0)       # (C, 1, 3, 3)

    def ref_conv(x, w, stride, dilation):
        return lax.conv_general_dilated(
            x, w,
            window_strides=(stride, stride),
            padding=((dilation, dilation), (dilation, dilation)),
            rhs_dilation=(dilation, dilation),
            dimension_numbers=("NCHW", "OIHW", "NCHW"),
            feature_group_count=C,
        )

    for stride, dilation in ((1, 1), (2, 1), (1, 2)):
        out = semantic_depthwise_conv2d(x, weight, stride=stride, dilation=dilation)
        out = jax.block_until_ready(out)
        ref = ref_conv(x, weight, stride, dilation)
        assert out.shape == ref.shape
        assert jnp.allclose(out, ref, atol=1e-4, rtol=1e-4)

    print("KERNEL_OK")
</pallas_src>

<mosaic_0001>
module attributes {stable_mosaic.version = 11 : i64} {
  func.func @_dw3x3_nhwc_kernel(%arg0: i32, %arg1: i32, %arg2: memref<1x16x16x64xf32, #tpu.memory_space<vmem>>, %arg3: memref<9x64xf32, #tpu.memory_space<vmem>>, %arg4: memref<1x16x16x64xf32, #tpu.memory_space<vmem>>, %arg5: memref<18x25x64xf32, #tpu.memory_space<vmem>>) attributes {dimension_semantics = [#tpu.dimension_semantics<parallel>, #tpu.dimension_semantics<parallel>], iteration_bounds = array<i64: 2, 1>, scalar_prefetch = 0 : i64, scratch_operands = 1 : i64, tpu.core_type = #tpu.core_type<tc>, window_params = [{transform_indices = @transform_0, window_bounds = array<i64: 1, 16, 16, 64>}, {transform_indices = @transform_1, window_bounds = array<i64: 9, 64>}, {transform_indices = @transform_2, window_bounds = array<i64: 1, 16, 16, 64>}]} {
    %cst = arith.constant 0.000000e+00 : f32
    %0 = vector.broadcast %cst : f32 to vector<18x25x64xf32>
    %c0 = arith.constant 0 : index
    %c0_0 = arith.constant 0 : index
    %c0_1 = arith.constant 0 : index
    %1 = vector.load %arg5[%c0, %c0_0, %c0_1] : memref<18x25x64xf32, #tpu.memory_space<vmem>>, vector<18x25x64xf32>
    tpu.vector_store %arg5[%c0, %c0_0, %c0_1], %0 {strides = array<i32>} : memref<18x25x64xf32, #tpu.memory_space<vmem>>, vector<18x25x64xf32>,
    %c0_2 = arith.constant 0 : index
    %c0_3 = arith.constant 0 : index
    %c0_4 = arith.constant 0 : index
    %c0_5 = arith.constant 0 : index
    %2 = vector.load %arg2[%c0_2, %c0_3, %c0_4, %c0_5] : memref<1x16x16x64xf32, #tpu.memory_space<vmem>>, vector<1x16x16x64xf32>
    %3 = vector.shape_cast %2 : vector<1x16x16x64xf32> to vector<16x16x64xf32>
    %c1 = arith.constant 1 : index
    %c8 = arith.constant 8 : index
    %c0_6 = arith.constant 0 : index
    %4 = vector.load %arg5[%c1, %c8, %c0_6] : memref<18x25x64xf32, #tpu.memory_space<vmem>>, vector<16x16x64xf32>
    tpu.vector_store %arg5[%c1, %c8, %c0_6], %3 {strides = array<i32>} : memref<18x25x64xf32, #tpu.memory_space<vmem>>, vector<16x16x64xf32>,
    %cst_7 = arith.constant 0.000000e+00 : f32
    %5 = vector.broadcast %cst_7 : f32 to vector<16x16x64xf32>
    %c0_8 = arith.constant 0 : index
    %c0_9 = arith.constant 0 : index
    %6 = vector.load %arg3[%c0_8, %c0_9] : memref<9x64xf32, #tpu.memory_space<vmem>>, vector<1x64xf32>
    %7 = vector.shape_cast %6 : vector<1x64xf32> to vector<64xf32>
    %c0_10 = arith.constant 0 : index
    %c7 = arith.constant 7 : index
    %c0_11 = arith.constant 0 : index
    %8 = vector.load %arg5[%c0_10, %c7, %c0_11] : memref<18x25x64xf32, #tpu.memory_space<vmem>>, vector<16x16x64xf32>
    %9 = vector.shape_cast %7 : vector<64xf32> to vector<1x1x64xf32>
    %10 = vector.broadcast %9 : vector<1x1x64xf32> to vector<16x16x64xf32>
    %11 = arith.mulf %10, %8 : vector<16x16x64xf32>
    %12 = arith.addf %5, %11 : vector<16x16x64xf32>
    %c1_12 = arith.constant 1 : index
    %c0_13 = arith.constant 0 : index
    %13 = vector.load %arg3[%c1_12, %c0_13] : memref<9x64xf32, #tpu.memory_space<vmem>>, vector<1x64xf32>
    %14 = vector.shape_cast %13 : vector<1x64xf32> to vector<64xf32>
    %c0_14 = arith.constant 0 : index
    %c8_15 = arith.constant 8 : index
    %c0_16 = arith.constant 0 : index
    %15 = vector.load %arg5[%c0_14, %c8_15, %c0_16] : memref<18x25x64xf32, #tpu.memory_space<vmem>>, vector<16x16x64xf32>
    %16 = vector.shape_cast %14 : vector<64xf32> to vector<1x1x64xf32>
    %17 = vector.broadcast %16 : vector<1x1x64xf32> to vector<16x16x64xf32>
    %18 = arith.mulf %17, %15 : vector<16x16x64xf32>
    %19 = arith.addf %12, %18 : vector<16x16x64xf32>
    %c2 = arith.constant 2 : index
    %c0_17 = arith.constant 0 : index
    %20 = vector.load %arg3[%c2, %c0_17] : memref<9x64xf32, #tpu.memory_space<vmem>>, vector<1x64xf32>
    %21 = vector.shape_cast %20 : vector<1x64xf32> to vector<64xf32>
    %c0_18 = arith.constant 0 : index
    %c9 = arith.constant 9 : index
    %c0_19 = arith.constant 0 : index
    %22 = vector.load %arg5[%c0_18, %c9, %c0_19] : memref<18x25x64xf32, #tpu.memory_space<vmem>>, vector<16x16x64xf32>
    %23 = vector.shape_cast %21 : vector<64xf32> to vector<1x1x64xf32>
    %24 = vector.broadcast %23 : vector<1x1x64xf32> to vector<16x16x64xf32>
    %25 = arith.mulf %24, %22 : vector<16x16x64xf32>
    %26 = arith.addf %19, %25 : vector<16x16x64xf32>
    %c3 = arith.constant 3 : index
    %c0_20 = arith.constant 0 : index
    %27 = vector.load %arg3[%c3, %c0_20] : memref<9x64xf32, #tpu.memory_space<vmem>>, vector<1x64xf32>
    %28 = vector.shape_cast %27 : vector<1x64xf32> to vector<64xf32>
    %c1_21 = arith.constant 1 : index
    %c7_22 = arith.constant 7 : index
    %c0_23 = arith.constant 0 : index
    %29 = vector.load %arg5[%c1_21, %c7_22, %c0_23] : memref<18x25x64xf32, #tpu.memory_space<vmem>>, vector<16x16x64xf32>
    %30 = vector.shape_cast %28 : vector<64xf32> to vector<1x1x64xf32>
    %31 = vector.broadcast %30 : vector<1x1x64xf32> to vector<16x16x64xf32>
    %32 = arith.mulf %31, %29 : vector<16x16x64xf32>
    %33 = arith.addf %26, %32 : vector<16x16x64xf32>
    %c4 = arith.constant 4 : index
    %c0_24 = arith.constant 0 : index
    %34 = vector.load %arg3[%c4, %c0_24] : memref<9x64xf32, #tpu.memory_space<vmem>>, vector<1x64xf32>
    %35 = vector.shape_cast %34 : vector<1x64xf32> to vector<64xf32>
    %c1_25 = arith.constant 1 : index
    %c8_26 = arith.constant 8 : index
    %c0_27 = arith.constant 0 : index
    %36 = vector.load %arg5[%c1_25, %c8_26, %c0_27] : memref<18x25x64xf32, #tpu.memory_space<vmem>>, vector<16x16x64xf32>
    %37 = vector.shape_cast %35 : vector<64xf32> to vector<1x1x64xf32>
    %38 = vector.broadcast %37 : vector<1x1x64xf32> to vector<16x16x64xf32>
    %39 = arith.mulf %38, %36 : vector<16x16x64xf32>
    %40 = arith.addf %33, %39 : vector<16x16x64xf32>
    %c5 = arith.constant 5 : index
    %c0_28 = arith.constant 0 : index
    %41 = vector.load %arg3[%c5, %c0_28] : memref<9x64xf32, #tpu.memory_space<vmem>>, vector<1x64xf32>
    %42 = vector.shape_cast %41 : vector<1x64xf32> to vector<64xf32>
    %c1_29 = arith.constant 1 : index
    %c9_30 = arith.constant 9 : index
    %c0_31 = arith.constant 0 : index
    %43 = vector.load %arg5[%c1_29, %c9_30, %c0_31] : memref<18x25x64xf32, #tpu.memory_space<vmem>>, vector<16x16x64xf32>
    %44 = vector.shape_cast %42 : vector<64xf32> to vector<1x1x64xf32>
    %45 = vector.broadcast %44 : vector<1x1x64xf32> to vector<16x16x64xf32>
    %46 = arith.mulf %45, %43 : vector<16x16x64xf32>
    %47 = arith.addf %40, %46 : vector<16x16x64xf32>
    %c6 = arith.constant 6 : index
    %c0_32 = arith.constant 0 : index
    %48 = vector.load %arg3[%c6, %c0_32] : memref<9x64xf32, #tpu.memory_space<vmem>>, vector<1x64xf32>
    %49 = vector.shape_cast %48 : vector<1x64xf32> to vector<64xf32>
    %c2_33 = arith.constant 2 : index
    %c7_34 = arith.constant 7 : index
    %c0_35 = arith.constant 0 : index
    %50 = vector.load %arg5[%c2_33, %c7_34, %c0_35] : memref<18x25x64xf32, #tpu.memory_space<vmem>>, vector<16x16x64xf32>
    %51 = vector.shape_cast %49 : vector<64xf32> to vector<1x1x64xf32>
    %52 = vector.broadcast %51 : vector<1x1x64xf32> to vector<16x16x64xf32>
    %53 = arith.mulf %52, %50 : vector<16x16x64xf32>
    %54 = arith.addf %47, %53 : vector<16x16x64xf32>
    %c7_36 = arith.constant 7 : index
    %c0_37 = arith.constant 0 : index
    %55 = vector.load %arg3[%c7_36, %c0_37] : memref<9x64xf32, #tpu.memory_space<vmem>>, vector<1x64xf32>
    %56 = vector.shape_cast %55 : vector<1x64xf32> to vector<64xf32>
    %c2_38 = arith.constant 2 : index
    %c8_39 = arith.constant 8 : index
    %c0_40 = arith.constant 0 : index
    %57 = vector.load %arg5[%c2_38, %c8_39, %c0_40] : memref<18x25x64xf32, #tpu.memory_space<vmem>>, vector<16x16x64xf32>
    %58 = vector.shape_cast %56 : vector<64xf32> to vector<1x1x64xf32>
    %59 = vector.broadcast %58 : vector<1x1x64xf32> to vector<16x16x64xf32>
    %60 = arith.mulf %59, %57 : vector<16x16x64xf32>
    %61 = arith.addf %54, %60 : vector<16x16x64xf32>
    %c8_41 = arith.constant 8 : index
    %c0_42 = arith.constant 0 : index
    %62 = vector.load %arg3[%c8_41, %c0_42] : memref<9x64xf32, #tpu.memory_space<vmem>>, vector<1x64xf32>
    %63 = vector.shape_cast %62 : vector<1x64xf32> to vector<64xf32>
    %c2_43 = arith.constant 2 : index
    %c9_44 = arith.constant 9 : index
    %c0_45 = arith.constant 0 : index
    %64 = vector.load %arg5[%c2_43, %c9_44, %c0_45] : memref<18x25x64xf32, #tpu.memory_space<vmem>>, vector<16x16x64xf32>
    %65 = vector.shape_cast %63 : vector<64xf32> to vector<1x1x64xf32>
    %66 = vector.broadcast %65 : vector<1x1x64xf32> to vector<16x16x64xf32>
    %67 = arith.mulf %66, %64 : vector<16x16x64xf32>
    %68 = arith.addf %61, %67 : vector<16x16x64xf32>
    %c0_46 = arith.constant 0 : index
    %c0_47 = arith.constant 0 : index
    %c0_48 = arith.constant 0 : index
    %c0_49 = arith.constant 0 : index
    %69 = vector.load %arg4[%c0_46, %c0_47, %c0_48, %c0_49] : memref<1x16x16x64xf32, #tpu.memory_space<vmem>>, vector<1x16x16x64xf32>
    %70 = vector.shape_cast %69 : vector<1x16x16x64xf32> to vector<16x16x64xf32>
    %71 = vector.shape_cast %68 : vector<16x16x64xf32> to vector<1x16x16x64xf32>
    tpu.vector_store %arg4[%c0_46, %c0_47, %c0_48, %c0_49], %71 {strides = array<i32>} : memref<1x16x16x64xf32, #tpu.memory_space<vmem>>, vector<1x16x16x64xf32>,
    return
  }
  func.func @transform_0(%arg0: i32, %arg1: i32) -> (i32, i32, i32, i32) {
    %c0_i32 = arith.constant 0 : i32
    %c0_i32_0 = arith.constant 0 : i32
    %c0_i32_1 = arith.constant 0 : i32
    return %arg0, %c0_i32, %c0_i32_0, %arg1 : i32, i32, i32, i32
  }
  func.func @transform_1(%arg0: i32, %arg1: i32) -> (i32, i32) {
    %c0_i32 = arith.constant 0 : i32
    %c0_i32_0 = arith.constant 0 : i32
    return %c0_i32, %arg1 : i32, i32
  }
  func.func @transform_2(%arg0: i32, %arg1: i32) -> (i32, i32, i32, i32) {
    %c0_i32 = arith.constant 0 : i32
    %c0_i32_0 = arith.constant 0 : i32
    %c0_i32_1 = arith.constant 0 : i32
    return %arg0, %c0_i32, %c0_i32_0, %arg1 : i32, i32, i32, i32
  }
}

</mosaic_0001>

<bundles_post_ra>
// kernel: tpu_custom_call.1
= control target key start
LH: loop header
LB: loop body
LE: loop exit
PB: predicated region body
PF: predicated region fallthrough
CT: control target
= control target key end

     0   :  { %7 = vsyncpa [#allocation4], 0  ;;  %s2484_s0 = inlined_call_operand.hbm [shape: f32[2,16,16,64], index: 0, kind: input, shape index: {}]   ;;  %s2485_s1 = inlined_call_operand.hbm [shape: f32[9,64], index: 1, kind: input, shape index: {}]   ;;  %s2486_s2 = inlined_call_operand.hbm [shape: f32[2,16,16,64], index: 2, kind: output, shape index: {}]  }
   0x1   :  { %9 = vsyncpa [#allocation4 + $0x1], 0 }
   0x2   :  { %10 = vsyncpa [#allocation7], 0 }
   0x3   :  { %11 = vsyncpa [#allocation5], 0 }
   0x4   :  { %13 = vsyncpa [#allocation5 + $0x1], 0  ;;  %s1672_s9 = smov 0   ;;  %s1674_s10 = smov 0  }
   0x5   :  { %s1676_s11 = smov 0   ;;  %s1678_s12 = smov 0  }
   0x6   :  { %s1680_s13 = smov 0   ;;  %s1682_s14 = smov 0  }
   0x7 LB: > { %s1394_s15 = sadd.s32 4294967295, %s1647_s14   ;;  %s1395_s16 = sadd.s32 4294967294, %s1647_s14   ;;  %s1647_s14 = sphi %s1682_s14, %s19_s14   ;;  %s1643_s13 = sphi %s1680_s13, %s2506_s13   ;;  %s1639_s12 = sphi %s1678_s12, %s2505_s12   ;;  %s1635_s11 = sphi %s1676_s11, %s2504_s11   ;;  %s1631_s10 = sphi %s1674_s10, %s2503_s10   ;;  %s1627_s9 = sphi %s1672_s9, %s2502_s9  }
   0x8   : > { %p53_p0 = scmp.ne.s32.totalorder %s1631_s10, %s1627_s9  ;;  %p1706_p1 = scmp.eq.s32.totalorder %s1394_s15, 0 }
   0x9   : > { %p1710_p2 = scmp.eq.s32.totalorder %s1394_s15, 1  ;;  %p111_p3 = scmp.eq.s32.totalorder %s1395_s16, 1 }
   0xa   : > { %p1716_p4 = por %p1706_p1, %p53_p0  ;;  %p1396_p5 = scmp.ge.s32.totalorder %s1647_s14, 1 }
   0xb   : > { %p1721_p6 = por %p111_p3, %p53_p0  ;;  %p118_p7 = scmp.lt.s32.totalorder %s1647_s14, 3 }
   0xc   : > { %s2491_s19 = scalar_select %p1716_p4, 1, 0 }
   0xd   : > { %s2492_s20 = scalar_select %p1721_p6, 1, 0 }
   0xe   : > { %p1726_p8 = pnand %p1396_p5, %p118_p7  ;;  %s1649_s22 = smov [#allocation6]  }
   0xf   : > { %s132_s23 = sshll.u32 %s1649_s22, 4  ;;  %s31_s25 = sadd.s32 1, %s1643_s13  ;;  %s133_s23 = int_to_ptr.vmem [resolvable:$true] %s132_s23 }
  0x10   : > { %p1430_p9 = pneg %p1726_p8  ;;  %s1520_s26 = scalar_lea.vmem %s133_s23, 256 }
  0x11   : > { %p1521_p13 = scmp.ne.s32.totalorder %s133_s23, %s1520_s26  ;;  %p1528_p5 = scmp.lt.s32.totalorder %s133_s23, %s133_s23 }
  0x12   : > { %p1735_p11 = pnand %p1430_p9, %p1706_p1  ;;  %p1529_p7 = scmp.lt.s32.totalorder %s1520_s26, %s1520_s26 }
  0x14   : > { %p1511_p12 = pneg %p1735_p11  ;;  %p1530_p6 = por %p1529_p7, %p1528_p5 }
  0x16   : > { %p1523_p0 = pnand %p1521_p13, %p1511_p12 }
  0x18   : > { %p1524_p3 = pneg %p1523_p0 }
  0x1a   : > { %p1531_p4 = pnand %p1530_p6, %p1524_p3 }
  0x1c   : > { %1534 = shalt.err (!%p1531_p4)
}
  0x1d   : > { %s2488_s27 = smov 128   ;;  %s1651_s28 = smov 8  }
  0x1e   : > { %1433 = dma.hbm_to_vmem [thread:$0]  (!%p1735_p11), %s2485_s1, 256, %s133_s23, [#allocation7], %s2488_s27, %s2488_s27, %s1651_s28  }
  0x1f   : > { %p33_p4 = scmp.ge.s32.totalorder %s31_s25, 2  ;;  %s40_s3 = sadd.s32 1, %s1635_s11 }
  0x20   : > { %p47_p6 = scmp.ne.s32.totalorder %s1635_s11, %s1631_s10  ;;  %p48_p9 = scmp.eq.s32.totalorder %s1647_s14, 0 }
  0x21   : > { %s2508_s25 = smov (%p33_p4, %s31_s25), 0  ;;  %p1443_p0 = scmp.lt.s32.totalorder %s1647_s14, 2 }
  0x22   : > { %p1756_p12 = por %p48_p9, %p47_p6  ;;  %p1762_p13 = por %p1710_p2, %p47_p6 }
  0x23   : > { %s35_s6 = ssub.s32 %s1643_s13, %s2508_s25  ;;  %s146_s7 = sand.u32 1, %s1635_s11  }
  0x24   : > { %p38_p11 = scmp.eq.s32.totalorder %s35_s6, 0  ;;  %s1399_s8 = sshll.u32 %s146_s7, 8 }
  0x25   : > { %s1420_s16 = sshll.u32 %s1643_s13, 12  ;;  %s150_s26 = scalar_lea.vmem [#allocation3], %s1399_s8 }
  0x26   : > { %s1771_s15 = scalar_select %p38_p11, %s1635_s11, %s40_s3  }
  0x27   : > { %s157_s24 = scalar_lea.hbm %s2484_s0, %s1420_s16  ;;  %s158_s29 = sshll.u32 %s150_s26, 4  ;;  %s159_s29 = int_to_ptr.vmem [resolvable:$true] %s158_s29 }
  0x28   : > { %p1779_p2 = pnand %p1443_p0, %p1756_p12  ;;  %s147_s30 = scalar_lea.sflag [#allocation4], %s146_s7 }
  0x29   : > { %s1548_s6 = scalar_lea.vmem %s159_s29, 4096  ;;  %s1652_s3 = smov [#allocation3]  }
  0x2a   : > { %p1537_p3 = pneg %p1779_p2  ;;  %p1549_p5 = scmp.ne.s32.totalorder %s159_s29, %s1548_s6 }
  0x2b   : > { %s1553_s27 = sshll.u32 %s1652_s3, 4  ;;  %s1554_s27 = int_to_ptr.vmem [resolvable:$false] %s1553_s27 }
  0x2c   : > { %p1551_p7 = pnand %p1549_p5, %p1537_p3  ;;  %s1555_s16 = scalar_lea.vmem %s1554_s27, 8192 }
  0x2d   : > { %p1556_p6 = scmp.lt.s32.totalorder %s159_s29, %s1554_s27  ;;  %p1557_p9 = scmp.lt.s32.totalorder %s1555_s16, %s1548_s6 }
  0x2e   : > { %p1552_p4 = pneg %p1551_p7 }
  0x2f   : > { %p1558_p11 = por %p1557_p9, %p1556_p6 }
  0x31   : > { %p1559_p10 = pnand %p1558_p11, %p1552_p4 }
  0x33   : > { %1562 = shalt.err (!%p1559_p10)
}
  0x34   : > { %s2498_s4 = smov 128   ;;  %170 = sbr.rel (%p1726_p8) target bundleno = 263 (0x107), region = 28 }
  0x35   : > { %1437 = dma.hbm_to_vmem [thread:$0]  (!%p1779_p2), %s157_s24, 4096, %s159_s29, %s147_s30, %s2498_s4, %s2498_s4, %s1651_s28  }
  0x36   : > { %s1793_s7 = sand.u32 (!%p1726_p8), 1, %s1631_s10   ;;  %p2499_p10 = scmp.ne.s32.totalorder (!%p1726_p8), %s2491_s19, 0 }
  0x37   : > { %s1403_s27 = sshll.u32 (!%p1726_p8), %s1793_s7, 8  ;;  %s173_s8 = scalar_lea.sflag (!%p1726_p8), [#allocation4], %s1793_s7 }
  0x38   : > { %s1799_s22 = scalar_lea.vmem (!%p1726_p8), [#allocation3], %s1403_s27 }
  0x39   : > { %1614 = dma.done.wait (%p2499_p10), %s173_s8, 4096  }
  0x3a   : > { %1616 = vsyncadd (%p2499_p10), %s173_s8, 4294963200 }
  0x3b   : > { %1618 = dma.done.wait (%p1706_p1), [#allocation7], 256  }
  0x3c   : > { %1620 = vsyncadd (%p1706_p1), [#allocation7], 4294967040  ;;  %vm201_vm0 = vcmask 523264   ;;  %vm205_vm1 = vcmask 516096   ;;  %v1653_v0 = vmov 0.0   ;;  %v275_v1 = vld [vmem:[%s1799_s22] sm:$0xff] }
  0x3d   : > { %202 = vst.msk [vmem:[#allocation2] sm:$0xff] %vm201_vm0, %v1653_v0  ;;  %203 = vst.msk [vmem:[#allocation2 + $0x8] sm:$0xff] %vm201_vm0, %v1653_v0  ;;  %v276_v2 = vld [vmem:[%s1799_s22 + $0x8] sm:$0xff]  ;;  %v277_v3 = vld [vmem:[%s1799_s22 + $0x10] sm:$0xff]  ;;  %s2079_s17 = scalar_lea.vmem [#allocation8], %s1403_s27  ;;  %s1421_s19 = sshll.u32 %s1639_s12, 12 }
  0x3e   : > { %204 = vst.msk [vmem:[#allocation2 + $0x10] sm:$0xff] %vm201_vm0, %v1653_v0  ;;  %207 = vst.msk [vmem:[#allocation2 + $0x20] sm:$0xff] %vm201_vm0, %v1653_v0  ;;  %v278_v4 = vld [vmem:[%s1799_s22 + $0x18] sm:$0xff]  ;;  %v279_v5 = vld [vmem:[%s1799_s22 + $0x20] sm:$0xff]  ;;  %s1297_s21 = sshll.u32 %s2079_s17, 4  ;;  %s2432_s24 = scalar_lea.hbm %s2486_s2, %s1421_s19  ;;  %s2434_s21 = int_to_ptr.vmem [resolvable:$true] %s1297_s21 }
  0x3f   : > { %208 = vst.msk [vmem:[#allocation2 + $0x28] sm:$0xff] %vm201_vm0, %v1653_v0  ;;  %209 = vst.msk [vmem:[#allocation2 + $0x30] sm:$0xff] %vm201_vm0, %v1653_v0  ;;  %v280_v6 = vld [vmem:[%s1799_s22 + $0x28] sm:$0xff]  ;;  %v281_v7 = vld [vmem:[%s1799_s22 + $0x30] sm:$0xff]  ;;  %s1283_s12 = scalar_lea.sflag [#allocation5], %s1793_s7  ;;  %s1563_s26 = scalar_lea.vmem %s2434_s21, 4096 }
  0x40   : > { %211 = vst.msk [vmem:[#allocation2 + $0x40] sm:$0xff] %vm201_vm0, %v1653_v0  ;;  %212 = vst.msk [vmem:[#allocation2 + $0x48] sm:$0xff] %vm201_vm0, %v1653_v0  ;;  %v282_v8 = vld [vmem:[%s1799_s22 + $0x38] sm:$0xff]  ;;  %v283_v9 = vld [vmem:[%s1799_s22 + $0x40] sm:$0xff]  ;;  %p1564_p1 = scmp.ne.s32.totalorder %s2434_s21, %s1563_s26  ;;  %s1654_s29 = smov [#allocation8]  }
  0x41   : > { %213 = vst.msk [vmem:[#allocation2 + $0x50] sm:$0xff] %vm201_vm0, %v1653_v0  ;;  %215 = vst.msk [vmem:[#allocation2 + $0x60] sm:$0xff] %vm201_vm0, %v1653_v0  ;;  %v284_v10 = vld [vmem:[%s1799_s22 + $0x48] sm:$0xff]  ;;  %v285_v11 = vld [vmem:[%s1799_s22 + $0x50] sm:$0xff]  ;;  %s1567_s18 = sshll.u32 %s1654_s29, 4  ;;  %s1568_s18 = int_to_ptr.vmem [resolvable:$false] %s1567_s18 }
  0x42   : > { %216 = vst.msk [vmem:[#allocation2 + $0x68] sm:$0xff] %vm201_vm0, %v1653_v0  ;;  %217 = vst.msk [vmem:[#allocation2 + $0x70] sm:$0xff] %vm201_vm0, %v1653_v0  ;;  %v286_v12 = vld [vmem:[%s1799_s22 + $0x58] sm:$0xff]  ;;  %v287_v13 = vld [vmem:[%s1799_s22 + $0x60] sm:$0xff]  ;;  %p1565_p8 = pnand %p1564_p1, %p1762_p13  ;;  %s1569_s30 = scalar_lea.vmem %s1568_s18, 8192 }
  0x43   : > { %219 = vst.msk [vmem:[#allocation2 + $0x80] sm:$0xff] %vm201_vm0, %v1653_v0  ;;  %220 = vst.msk [vmem:[#allocation2 + $0x88] sm:$0xff] %vm201_vm0, %v1653_v0  ;;  %v288_v14 = vld [vmem:[%s1799_s22 + $0x68] sm:$0xff]  ;;  %v289_v15 = vld [vmem:[%s1799_s22 + $0x70] sm:$0xff]  ;;  %p1570_p0 = scmp.lt.s32.totalorder %s2434_s21, %s1568_s18  ;;  %p1571_p2 = scmp.lt.s32.totalorder %s1569_s30, %s1563_s26 }
  0x44   : > { %221 = vst.msk [vmem:[#allocation2 + $0x90] sm:$0xff] %vm201_vm0, %v1653_v0  ;;  %223 = vst.msk [vmem:[#allocation2 + $0xa0] sm:$0xff] %vm201_vm0, %v1653_v0  ;;  %v290_v16 = vld [vmem:[%s1799_s22 + $0x78] sm:$0xff]  ;;  %v291_v17 = vld [vmem:[%s1799_s22 + $0x80] sm:$0xff]  ;;  %p1566_p12 = pneg %p1565_p8 }
  0x45   : > { %224 = vst.msk [vmem:[#allocation2 + $0xa8] sm:$0xff] %vm201_vm0, %v1653_v0  ;;  %225 = vst.msk [vmem:[#allocation2 + $0xb0] sm:$0xff] %vm201_vm0, %v1653_v0  ;;  %v292_v18 = vld [vmem:[%s1799_s22 + $0x88] sm:$0xff]  ;;  %v293_v19 = vld [vmem:[%s1799_s22 + $0x90] sm:$0xff]  ;;  %p1572_p3 = por %p1571_p2, %p1570_p0 }
  0x46   : > { %227 = vst.msk [vmem:[#allocation2 + $0xc0] sm:$0xff] %vm201_vm0, %v1653_v0  ;;  %228 = vst.msk [vmem:[#allocation2 + $0xc8] sm:$0xff] %vm201_vm0, %v1653_v0  ;;  %v294_v20 = vld [vmem:[%s1799_s22 + $0x98] sm:$0xff]  ;;  %v295_v21 = vld [vmem:[%s1799_s22 + $0xa0] sm:$0xff] }
  0x47   : > { %229 = vst.msk [vmem:[#allocation2 + $0xd0] sm:$0xff] %vm201_vm0, %v1653_v0  ;;  %231 = vst.msk [vmem:[#allocation2 + $0xe0] sm:$0xff] %vm201_vm0, %v1653_v0  ;;  %v296_v22 = vld [vmem:[%s1799_s22 + $0xa8] sm:$0xff]  ;;  %v297_v23 = vld [vmem:[%s1799_s22 + $0xb0] sm:$0xff]  ;;  %p1573_p5 = pnand %p1572_p3, %p1566_p12 }
  0x48   : > { %232 = vst.msk [vmem:[#allocation2 + $0xe8] sm:$0xff] %vm201_vm0, %v1653_v0  ;;  %233 = vst.msk [vmem:[#allocation2 + $0xf0] sm:$0xff] %vm201_vm0, %v1653_v0  ;;  %v298_v24 = vld [vmem:[%s1799_s22 + $0xb8] sm:$0xff]  ;;  %v299_v25 = vld [vmem:[%s1799_s22 + $0xc0] sm:$0xff] }
  0x49   : > { %235 = vst.msk [vmem:[#allocation2 + $0x100] sm:$0xff] %vm201_vm0, %v1653_v0  ;;  %236 = vst.msk [vmem:[#allocation2 + $0x108] sm:$0xff] %vm201_vm0, %v1653_v0  ;;  %v300_v26 = vld [vmem:[%s1799_s22 + $0xc8] sm:$0xff]  ;;  %v301_v27 = vld [vmem:[%s1799_s22 + $0xd0] sm:$0xff] }
  0x4a   : > { %237 = vst.msk [vmem:[#allocation2 + $0x110] sm:$0xff] %vm201_vm0, %v1653_v0  ;;  %239 = vst.msk [vmem:[#allocation2 + $0x120] sm:$0xff] %vm201_vm0, %v1653_v0  ;;  %v302_v28 = vld [vmem:[%s1799_s22 + $0xd8] sm:$0xff]  ;;  %v303_v29 = vld [vmem:[%s1799_s22 + $0xe0] sm:$0xff] }
  0x4b   : > { %240 = vst.msk [vmem:[#allocation2 + $0x128] sm:$0xff] %vm201_vm0, %v1653_v0  ;;  %241 = vst.msk [vmem:[#allocation2 + $0x130] sm:$0xff] %vm201_vm0, %v1653_v0  ;;  %v304_v30 = vld [vmem:[%s1799_s22 + $0xe8] sm:$0xff]  ;;  %v305_v31 = vld [vmem:[%s1799_s22 + $0xf0] sm:$0xff] }
  0x4c   : > { %243 = vst.msk [vmem:[#allocation2 + $0x140] sm:$0xff] %vm201_vm0, %v1653_v0  ;;  %244 = vst.msk [vmem:[#allocation2 + $0x148] sm:$0xff] %vm201_vm0, %v1653_v0  ;;  %v306_v32 = vld [vmem:[%s1799_s22 + $0xf8] sm:$0xff]  ;;  %v2015_v33 = vld [vmem:[#allocation6] ss:$0 sm:$0xff] }
  0x4d   : > { %245 = vst.msk [vmem:[#allocation2 + $0x150] sm:$0xff] %vm201_vm0, %v1653_v0  ;;  %247 = vst.msk [vmem:[#allocation2 + $0x160] sm:$0xff] %vm201_vm0, %v1653_v0  ;;  %v341_v34 = vld [vmem:[#allocation2 + $0x7] sm:$0xff]  ;;  %v2019_v35 = vld [vmem:[#allocation6 + $0x1] ss:$0 sm:$0xff] }
  0x4e   : > { %248 = vst.msk [vmem:[#allocation2 + $0x168] sm:$0xff] %vm201_vm0, %v1653_v0  ;;  %249 = vst.msk [vmem:[#allocation2 + $0x170] sm:$0xff] %vm201_vm0, %v1653_v0  ;;  %v442_v36 = vld [vmem:[#allocation2 + $0x8] sm:$0xff]  ;;  %v377_v37 = vmul.f32 %v2015_v33, %v341_v34  ;;  %v2023_v39 = vld [vmem:[#allocation6 + $0x2] ss:$0 sm:$0xff] }
  0x4f   : > { %251 = vst.msk [vmem:[#allocation2 + $0x180] sm:$0xff] %vm201_vm0, %v1653_v0  ;;  %252 = vst.msk [vmem:[#allocation2 + $0x188] sm:$0xff] %vm201_vm0, %v1653_v0  ;;  %v478_v38 = vmul.f32 %v2019_v35, %v442_v36  ;;  %v543_v40 = vld [vmem:[#allocation2 + $0x9] sm:$0xff]  ;;  %v2025_v41 = vld [vmem:[#allocation6 + $0x3] ss:$0 sm:$0xff] }
  0x50   : > { %253 = vst.msk [vmem:[#allocation2 + $0x190] sm:$0xff] %vm201_vm0, %v1653_v0  ;;  %255 = vst.msk [vmem:[#allocation2 + $0x1a0] sm:$0xff] %vm201_vm0, %v1653_v0  ;;  %v579_v42 = vmul.f32 %v2023_v39, %v543_v40  ;;  %v2030_v49 = vld [vmem:[#allocation6 + $0x4] ss:$0 sm:$0xff]  ;;  %v2033_v52 = vld [vmem:[#allocation6 + $0x5] ss:$0 sm:$0xff] }
  0x51   : > { %256 = vst.msk [vmem:[#allocation2 + $0x1a8] sm:$0xff] %vm201_vm0, %v1653_v0  ;;  %257 = vst.msk [vmem:[#allocation2 + $0x1b0] sm:$0xff] %vm201_vm0, %v1653_v0  ;;  %v510_v45 = vadd.f32 %v478_v38, %v377_v37  ;;  %v342_v54 = vld [vmem:[#allocation2 + $0xf] sm:$0xff]  ;;  %v2038_v63 = vld [vmem:[#allocation6 + $0x6] ss:$0 sm:$0xff] }
  0x52   : > { %259 = vst.msk [vmem:[#allocation2 + $0x1c0] sm:$0xff] %vm201_vm0, %v1653_v0  ;;  %260 = vst.msk [vmem:[#allocation2 + $0x1c8] sm:$0xff] %vm201_vm0, %v1653_v0  ;;  %v378_v55 = vmul.f32 %v2015_v33, %v342_v54  ;;  %v443_v56 = vld [vmem:[#allocation2 + $0x10] sm:$0xff] }
  0x53   : > { %261 = vst.msk [vmem:[#allocation2 + $0x1d0] sm:$0xff] %vm201_vm0, %v1653_v0  ;;  %263 = vst.msk [vmem:[#allocation2 + $0x1e0] sm:$0xff] %vm201_vm0, %v1653_v0  ;;  %v611_v51 = vadd.f32 %v579_v42, %v510_v45 }
  0x54   : > { %264 = vst.msk [vmem:[#allocation2 + $0x1e8] sm:$0xff] %vm201_vm0, %v1653_v0  ;;  %265 = vst.msk [vmem:[#allocation2 + $0x1f0] sm:$0xff] %vm201_vm0, %v1653_v0 }
  0x55   : > { %267 = vst.msk [vmem:[#allocation2 + $0x200] sm:$0xff] %vm201_vm0, %v1653_v0  ;;  %268 = vst.msk [vmem:[#allocation2 + $0x208] sm:$0xff] %vm201_vm0, %v1653_v0 }
  0x56   : > { %269 = vst.msk [vmem:[#allocation2 + $0x210] sm:$0xff] %vm201_vm0, %v1653_v0  ;;  %271 = vst.msk [vmem:[#allocation2 + $0x220] sm:$0xff] %vm201_vm0, %v1653_v0 }
  0x57   : > { %272 = vst.msk [vmem:[#allocation2 + $0x228] sm:$0xff] %vm201_vm0, %v1653_v0  ;;  %273 = vst.msk [vmem:[#allocation2 + $0x230] sm:$0xff] %vm201_vm0, %v1653_v0 }
  0x58   : > { %206 = vst.msk [vmem:[#allocation2 + $0x18] sm:$0x1] %vm205_vm1, %v1653_v0  ;;  %210 = vst.msk [vmem:[#allocation2 + $0x38] sm:$0x1] %vm205_vm1, %v1653_v0 }
  0x59   : > { %214 = vst.msk [vmem:[#allocation2 + $0x58] sm:$0x1] %vm205_vm1, %v1653_v0  ;;  %218 = vst.msk [vmem:[#allocation2 + $0x78] sm:$0x1] %vm205_vm1, %v1653_v0 }
  0x5a   : > { %222 = vst.msk [vmem:[#allocation2 + $0x98] sm:$0x1] %vm205_vm1, %v1653_v0  ;;  %226 = vst.msk [vmem:[#allocation2 + $0xb8] sm:$0x1] %vm205_vm1, %v1653_v0 }
  0x5b   : > { %230 = vst.msk [vmem:[#allocation2 + $0xd8] sm:$0x1] %vm205_vm1, %v1653_v0  ;;  %234 = vst.msk [vmem:[#allocation2 + $0xf8] sm:$0x1] %vm205_vm1, %v1653_v0 }
  0x5c   : > { %238 = vst.msk [vmem:[#allocation2 + $0x118] sm:$0x1] %vm205_vm1, %v1653_v0  ;;  %242 = vst.msk [vmem:[#allocation2 + $0x138] sm:$0x1] %vm205_vm1, %v1653_v0 }
  0x5d   : > { %246 = vst.msk [vmem:[#allocation2 + $0x158] sm:$0x1] %vm205_vm1, %v1653_v0  ;;  %250 = vst.msk [vmem:[#allocation2 + $0x178] sm:$0x1] %vm205_vm1, %v1653_v0 }
  0x5e   : > { %254 = vst.msk [vmem:[#allocation2 + $0x198] sm:$0x1] %vm205_vm1, %v1653_v0  ;;  %258 = vst.msk [vmem:[#allocation2 + $0x1b8] sm:$0x1] %vm205_vm1, %v1653_v0 }
  0x5f   : > { %262 = vst.msk [vmem:[#allocation2 + $0x1d8] sm:$0x1] %vm205_vm1, %v1653_v0  ;;  %266 = vst.msk [vmem:[#allocation2 + $0x1f8] sm:$0x1] %vm205_vm1, %v1653_v0  ;;  %v544_v57 = vld [vmem:[#allocation2 + $0x11] sm:$0xff] }
  0x60   : > { %270 = vst.msk [vmem:[#allocation2 + $0x218] sm:$0x1] %vm205_vm1, %v1653_v0  ;;  %274 = vst.msk [vmem:[#allocation2 + $0x238] sm:$0x1] %vm205_vm1, %v1653_v0  ;;  %v2040_v0 = vld [vmem:[#allocation6 + $0x7] ss:$0 sm:$0xff] }
  0x61   : > { %308 = vst.msk [vmem:[#allocation2 + $0x28] sm:$0xff] %vm201_vm0, %v275_v1  ;;  %309 = vst.msk [vmem:[#allocation2 + $0x30] sm:$0xff] %vm201_vm0, %v276_v2  ;;  %v479_v2 = vmul.f32 %v2019_v35, %v443_v56 }
  0x62   : > { %310 = vst.msk [vmem:[#allocation2 + $0x48] sm:$0xff] %vm201_vm0, %v277_v3  ;;  %311 = vst.msk [vmem:[#allocation2 + $0x50] sm:$0xff] %vm201_vm0, %v278_v4  ;;  %v580_v3 = vmul.f32 %v2023_v39, %v544_v57  ;;  %v2044_v4 = vld [vmem:[#allocation6 + $0x8] ss:$0 sm:$0xff] }
  0x63   : > { %312 = vst.msk [vmem:[#allocation2 + $0x68] sm:$0xff] %vm201_vm0, %v279_v5  ;;  %313 = vst.msk [vmem:[#allocation2 + $0x70] sm:$0xff] %vm201_vm0, %v280_v6 }
  0x64   : > { %314 = vst.msk [vmem:[#allocation2 + $0x88] sm:$0xff] %vm201_vm0, %v281_v7  ;;  %315 = vst.msk [vmem:[#allocation2 + $0x90] sm:$0xff] %vm201_vm0, %v282_v8 }
  0x65   : > { %316 = vst.msk [vmem:[#allocation2 + $0xa8] sm:$0xff] %vm201_vm0, %v283_v9  ;;  %317 = vst.msk [vmem:[#allocation2 + $0xb0] sm:$0xff] %vm201_vm0, %v284_v10  ;;  %v511_v10 = vadd.f32 %v479_v2, %v378_v55 }
  0x66   : > { %318 = vst.msk [vmem:[#allocation2 + $0xc8] sm:$0xff] %vm201_vm0, %v285_v11  ;;  %319 = vst.msk [vmem:[#allocation2 + $0xd0] sm:$0xff] %vm201_vm0, %v286_v12 }
  0x67   : > { %320 = vst.msk [vmem:[#allocation2 + $0xe8] sm:$0xff] %vm201_vm0, %v287_v13  ;;  %321 = vst.msk [vmem:[#allocation2 + $0xf0] sm:$0xff] %vm201_vm0, %v288_v14 }
  0x68   : > { %322 = vst.msk [vmem:[#allocation2 + $0x108] sm:$0xff] %vm201_vm0, %v289_v15  ;;  %323 = vst.msk [vmem:[#allocation2 + $0x110] sm:$0xff] %vm201_vm0, %v290_v16  ;;  %v644_v43 = vld [vmem:[#allocation2 + $0x27] sm:$0xff]  ;;  %v645_v58 = vld [vmem:[#allocation2 + $0x2f] sm:$0xff] }
  0x69   : > { %324 = vst.msk [vmem:[#allocation2 + $0x128] sm:$0xff] %vm201_vm0, %v291_v17  ;;  %325 = vst.msk [vmem:[#allocation2 + $0x130] sm:$0xff] %vm201_vm0, %v292_v18  ;;  %v745_v44 = vld [vmem:[#allocation2 + $0x28] sm:$0xff]  ;;  %v680_v46 = vmul.f32 %v2025_v41, %v644_v43  ;;  %v379_v48 = vmul.f32 %v2015_v33, %v644_v43  ;;  %v681_v11 = vmul.f32 %v2025_v41, %v645_v58  ;;  %v746_v12 = vld [vmem:[#allocation2 + $0x30] sm:$0xff] }
  0x6a   : > { %326 = vst.msk [vmem:[#allocation2 + $0x148] sm:$0xff] %vm201_vm0, %v293_v19  ;;  %327 = vst.msk [vmem:[#allocation2 + $0x150] sm:$0xff] %vm201_vm0, %v294_v20  ;;  %v846_v47 = vld [vmem:[#allocation2 + $0x29] sm:$0xff]  ;;  %v480_v50 = vmul.f32 %v2019_v35, %v745_v44  ;;  %v781_v62 = vmul.f32 %v2030_v49, %v745_v44  ;;  %v847_v15 = vld [vmem:[#allocation2 + $0x31] sm:$0xff] }
  0x6b   : > { %328 = vst.msk [vmem:[#allocation2 + $0x168] sm:$0xff] %vm201_vm0, %v295_v21  ;;  %329 = vst.msk [vmem:[#allocation2 + $0x170] sm:$0xff] %vm201_vm0, %v296_v22  ;;  %v948_v53 = vld [vmem:[#allocation2 + $0x47] sm:$0xff]  ;;  %v581_v60 = vmul.f32 %v2023_v39, %v846_v47  ;;  %v712_v61 = vadd.f32 %v680_v46, %v611_v51  ;;  %v882_v9 = vmul.f32 %v2033_v52, %v846_v47  ;;  %v949_v16 = vld [vmem:[#allocation2 + $0x4f] sm:$0xff] }
  0x6c   : > { %330 = vst.msk [vmem:[#allocation2 + $0x188] sm:$0xff] %vm201_vm0, %v297_v23  ;;  %331 = vst.msk [vmem:[#allocation2 + $0x190] sm:$0xff] %vm201_vm0, %v298_v24  ;;  %v512_v59 = vadd.f32 %v480_v50, %v379_v48  ;;  %v1049_v1 = vld [vmem:[#allocation2 + $0x48] sm:$0xff]  ;;  %v682_v7 = vmul.f32 %v2025_v41, %v948_v53  ;;  %v984_v13 = vmul.f32 %v2038_v63, %v948_v53  ;;  %v1050_v34 = vld [vmem:[#allocation2 + $0x50] sm:$0xff] }
  0x6d   : > { %332 = vst.msk [vmem:[#allocation2 + $0x1a8] sm:$0xff] %vm201_vm0, %v299_v25  ;;  %333 = vst.msk [vmem:[#allocation2 + $0x1b0] sm:$0xff] %vm201_vm0, %v300_v26  ;;  %v1150_v5 = vld [vmem:[#allocation2 + $0x49] sm:$0xff]  ;;  %v813_v8 = vadd.f32 %v781_v62, %v712_v61  ;;  %v1085_v14 = vmul.f32 %v2040_v0, %v1049_v1  ;;  %v783_v18 = vmul.f32 %v2030_v49, %v1049_v1  ;;  %v1151_v47 = vld [vmem:[#allocation2 + $0x51] sm:$0xff] }
  0x6e   : > { %334 = vst.msk [vmem:[#allocation2 + $0x1c8] sm:$0xff] %vm201_vm0, %v301_v27  ;;  %335 = vst.msk [vmem:[#allocation2 + $0x1d0] sm:$0xff] %vm201_vm0, %v302_v28  ;;  %v613_v6 = vadd.f32 %v581_v60, %v512_v59  ;;  %v1186_v20 = vmul.f32 %v2044_v4, %v1150_v5  ;;  %v612_v21 = vadd.f32 %v580_v3, %v511_v10  ;;  %v2053_v22 = vld [vmem:[#allocation2 + $0x67] sm:$0xff]  ;;  %v951_v61 = vld [vmem:[#allocation2 + $0x6f] sm:$0xff] }
  0x6f   : > { %336 = vst.msk [vmem:[#allocation2 + $0x1e8] sm:$0xff] %vm201_vm0, %v303_v29  ;;  %337 = vst.msk [vmem:[#allocation2 + $0x1f0] sm:$0xff] %vm201_vm0, %v304_v30  ;;  %v914_v19 = vadd.f32 %v882_v9, %v813_v8  ;;  %v380_v23 = vmul.f32 %v2015_v33, %v645_v58  ;;  %v782_v24 = vmul.f32 %v2030_v49, %v746_v12  ;;  %v2058_v27 = vld [vmem:[#allocation2 + $0x68] sm:$0xff]  ;;  %v1153_v10 = vld [vmem:[#allocation2 + $0x71] sm:$0xff] }
  0x70   : > { %338 = vst.msk [vmem:[#allocation2 + $0x208] sm:$0xff] %vm201_vm0, %v305_v31  ;;  %339 = vst.msk [vmem:[#allocation2 + $0x210] sm:$0xff] %vm201_vm0, %v306_v32  ;;  %v714_v17 = vadd.f32 %v682_v7, %v613_v6  ;;  %v884_v26 = vmul.f32 %v2033_v52, %v1150_v5  ;;  %v481_v28 = vmul.f32 %v2019_v35, %v746_v12  ;;  %v2065_v38 = vld [vmem:[#allocation2 + $0x69] sm:$0xff] }
  0x71   : > { %v1016_v29 = vadd.f32 %v984_v13, %v914_v19  ;;  %v713_v30 = vadd.f32 %v681_v11, %v612_v21  ;;  %v883_v31 = vmul.f32 %v2033_v52, %v847_v15  ;;  %v985_v32 = vmul.f32 %v2038_v63, %v949_v16  ;;  %v1052_v6 = vld [vmem:[#allocation2 + $0x70] sm:$0xff]  ;;  %v952_v21 = vld [vmem:[#allocation2 + $0x87] sm:$0xff] }
  0x72   : > { %v815_v25 = vadd.f32 %v783_v18, %v714_v17  ;;  %v986_v37 = vmul.f32 %v2038_v63, %v2053_v22  ;;  %v513_v40 = vadd.f32 %v481_v28, %v380_v23  ;;  %v582_v42 = vmul.f32 %v2023_v39, %v847_v15 }
  0x73   : > { %v1117_v43 = vadd.f32 %v1085_v14, %v1016_v29  ;;  %v814_v44 = vadd.f32 %v782_v24, %v713_v30  ;;  %v1087_v45 = vmul.f32 %v2040_v0, %v2058_v27  ;;  %v381_v46 = vmul.f32 %v2015_v33, %v948_v53  ;;  %v1053_v24 = vld [vmem:[#allocation2 + $0x88] sm:$0xff] }
  0x74   : > { %v916_v36 = vadd.f32 %v884_v26, %v815_v25  ;;  %v614_v50 = vadd.f32 %v582_v42, %v513_v40  ;;  %v683_v51 = vmul.f32 %v2025_v41, %v949_v16  ;;  %v482_v54 = vmul.f32 %v2019_v35, %v1049_v1  ;;  %v1154_v25 = vld [vmem:[#allocation2 + $0x89] sm:$0xff] }
  0x75   : > { %v1218_v55 = vadd.f32 %v1186_v20, %v1117_v43  ;;  %v915_v56 = vadd.f32 %v883_v31, %v814_v44  ;;  %v1188_v57 = vmul.f32 %v2044_v4, %v2065_v38  ;;  %v784_v58 = vmul.f32 %v2030_v49, %v1050_v34 }
  0x76   : > { %v1018_v48 = vadd.f32 %v986_v37, %v916_v36  ;;  %v715_v60 = vadd.f32 %v683_v51, %v614_v50  ;;  %v514_v62 = vadd.f32 %v482_v54, %v381_v46  ;;  %v583_v53 = vmul.f32 %v2023_v39, %v1150_v5 }
  0x77   : > { %1250 = vst.msk [vmem:[%s2079_s17] sm:$0xff] %vm201_vm0, %v1218_v55  ;;  %v1017_v1 = vadd.f32 %v985_v32, %v915_v56  ;;  %v1086_v2 = vmul.f32 %v2040_v0, %v1050_v34  ;;  %v885_v3 = vmul.f32 %v2033_v52, %v1151_v47  ;;  %v684_v7 = vmul.f32 %v2025_v41, %v2053_v22 }
  0x78   : > { %v1119_v59 = vadd.f32 %v1087_v45, %v1018_v48  ;;  %v816_v9 = vadd.f32 %v784_v58, %v715_v60  ;;  %v615_v5 = vadd.f32 %v583_v53, %v514_v62  ;;  %v382_v11 = vmul.f32 %v2015_v33, %v949_v16  ;;  %v1054_v48 = vld [vmem:[#allocation2 + $0x90] sm:$0xff] }
  0x79   : > { %v1118_v12 = vadd.f32 %v1086_v2, %v1017_v1  ;;  %v1187_v13 = vmul.f32 %v2044_v4, %v1151_v47  ;;  %v987_v14 = vmul.f32 %v2038_v63, %v951_v61  ;;  %v483_v15 = vmul.f32 %v2019_v35, %v1050_v34 }
  0x7a   : > { %v1220_v8 = vadd.f32 %v1188_v57, %v1119_v59  ;;  %v917_v17 = vadd.f32 %v885_v3, %v816_v9  ;;  %v1088_v18 = vmul.f32 %v2040_v0, %v1052_v6  ;;  %v716_v19 = vadd.f32 %v684_v7, %v615_v5  ;;  %v1155_v3 = vld [vmem:[#allocation2 + $0x91] sm:$0xff] }
  0x7b   : > { %v785_v20 = vmul.f32 %v2030_v49, %v2058_v27  ;;  %v1219_v23 = vadd.f32 %v1187_v13, %v1118_v12  ;;  %v1189_v16 = vmul.f32 %v2044_v4, %v1153_v10  ;;  %v515_v26 = vadd.f32 %v483_v15, %v382_v11  ;;  %v1055_v15 = vld [vmem:[#allocation2 + $0xa8] sm:$0xff] }
  0x7c   : > { %1252 = vst.msk [vmem:[%s2079_s17 + $0x10] sm:$0xff] %vm201_vm0, %v1220_v8  ;;  %v584_v28 = vmul.f32 %v2023_v39, %v1151_v47  ;;  %v1019_v29 = vadd.f32 %v987_v14, %v917_v17  ;;  %v886_v31 = vmul.f32 %v2033_v52, %v2065_v38  ;;  %v383_v32 = vmul.f32 %v2015_v33, %v2053_v22  ;;  %v953_v47 = vld [vmem:[#allocation2 + $0x8f] sm:$0xff] }
  0x7d   : > { %v817_v30 = vadd.f32 %v785_v20, %v716_v19  ;;  %1251 = vst.msk [vmem:[%s2079_s17 + $0x8] sm:$0xff] %vm201_vm0, %v1219_v23  ;;  %v988_v34 = vmul.f32 %v2038_v63, %v952_v21  ;;  %v685_v37 = vmul.f32 %v2025_v41, %v951_v61  ;;  %v484_v40 = vmul.f32 %v2019_v35, %v2058_v27 }
  0x7e   : > { %v616_v36 = vadd.f32 %v584_v28, %v515_v26  ;;  %v1120_v42 = vadd.f32 %v1088_v18, %v1019_v29  ;;  %v1089_v44 = vmul.f32 %v2040_v0, %v1053_v24  ;;  %v1190_v45 = vmul.f32 %v2044_v4, %v1154_v25  ;;  %v1156_v28 = vld [vmem:[#allocation2 + $0xa9] sm:$0xff] }
  0x7f   : > { %v918_v43 = vadd.f32 %v886_v31, %v817_v30  ;;  %v786_v22 = vmul.f32 %v2030_v49, %v1052_v6  ;;  %v516_v50 = vadd.f32 %v484_v40, %v383_v32  ;;  %v585_v51 = vmul.f32 %v2023_v39, %v2065_v38  ;;  %v955_v29 = vld [vmem:[#allocation2 + $0xaf] sm:$0xff] }
  0x80   : > { %v717_v46 = vadd.f32 %v685_v37, %v616_v36  ;;  %v1221_v54 = vadd.f32 %v1189_v16, %v1120_v42  ;;  %v887_v27 = vmul.f32 %v2033_v52, %v1153_v10  ;;  %v384_v56 = vmul.f32 %v2015_v33, %v951_v61  ;;  %v954_v61 = vld [vmem:[#allocation2 + $0xa7] sm:$0xff]  ;;  %v1056_v30 = vld [vmem:[#allocation2 + $0xb0] sm:$0xff] }
  0x81   : > { %v1020_v55 = vadd.f32 %v988_v34, %v918_v43  ;;  %v617_v58 = vadd.f32 %v585_v51, %v516_v50  ;;  %v686_v59 = vmul.f32 %v2025_v41, %v952_v21  ;;  %v485_v60 = vmul.f32 %v2019_v35, %v1052_v6 }
  0x82   : > { %v818_v57 = vadd.f32 %v786_v22, %v717_v46  ;;  %1253 = vst.msk [vmem:[%s2079_s17 + $0x18] sm:$0xff] %vm201_vm0, %v1221_v54  ;;  %v989_v53 = vmul.f32 %v2038_v63, %v953_v47  ;;  %v1090_v1 = vmul.f32 %v2040_v0, %v1054_v48  ;;  %v787_v38 = vmul.f32 %v2030_v49, %v1053_v24 }
  0x83   : > { %v1121_v62 = vadd.f32 %v1089_v44, %v1020_v55  ;;  %v718_v7 = vadd.f32 %v686_v59, %v617_v58  ;;  %v517_v8 = vadd.f32 %v485_v60, %v384_v56  ;;  %v586_v9 = vmul.f32 %v2023_v39, %v1153_v10  ;;  %v956_v55 = vld [vmem:[#allocation2 + $0xc7] sm:$0xff] }
  0x84   : > { %v919_v2 = vadd.f32 %v887_v27, %v818_v57  ;;  %v888_v6 = vmul.f32 %v2033_v52, %v1154_v25  ;;  %v687_v11 = vmul.f32 %v2025_v41, %v953_v47  ;;  %v385_v12 = vmul.f32 %v2015_v33, %v952_v21  ;;  %v1057_v57 = vld [vmem:[#allocation2 + $0xc8] sm:$0xff] }
  0x85   : > { %v1222_v5 = vadd.f32 %v1190_v45, %v1121_v62  ;;  %v819_v14 = vadd.f32 %v787_v38, %v718_v7  ;;  %v618_v17 = vadd.f32 %v586_v9, %v517_v8  ;;  %v486_v18 = vmul.f32 %v2019_v35, %v1053_v24  ;;  %v1158_v58 = vld [vmem:[#allocation2 + $0xc9] sm:$0xff] }
  0x86   : > { %v1021_v13 = vadd.f32 %v989_v53, %v919_v2  ;;  %v1191_v19 = vmul.f32 %v2044_v4, %v1155_v3  ;;  %v990_v20 = vmul.f32 %v2038_v63, %v954_v61  ;;  %v788_v10 = vmul.f32 %v2030_v49, %v1054_v48 }
  0x87   : > { %1254 = vst.msk [vmem:[%s2079_s17 + $0x20] sm:$0xff] %vm201_vm0, %v1222_v5  ;;  %v587_v23 = vmul.f32 %v2023_v39, %v1154_v25  ;;  %v920_v26 = vadd.f32 %v888_v6, %v819_v14  ;;  %v719_v21 = vadd.f32 %v687_v11, %v618_v17  ;;  %v518_v31 = vadd.f32 %v486_v18, %v385_v12  ;;  %v1157_v25 = vld [vmem:[#allocation2 + $0xb1] sm:$0xff] }
  0x88   : > { %v1122_v16 = vadd.f32 %v1090_v1, %v1021_v13  ;;  %v1091_v24 = vmul.f32 %v2040_v0, %v1055_v15  ;;  %v889_v32 = vmul.f32 %v2033_v52, %v1155_v3  ;;  %v688_v34 = vmul.f32 %v2025_v41, %v954_v61  ;;  %v1058_v13 = vld [vmem:[#allocation2 + $0xd0] sm:$0xff] }
  0x89   : > { %v386_v36 = vmul.f32 %v2015_v33, %v953_v47  ;;  %v1022_v40 = vadd.f32 %v990_v20, %v920_v26  ;;  %v820_v42 = vadd.f32 %v788_v10, %v719_v21  ;;  %v619_v43 = vadd.f32 %v587_v23, %v518_v31 }
  0x8a   : > { %v1223_v37 = vadd.f32 %v1191_v19, %v1122_v16  ;;  %v1192_v44 = vmul.f32 %v2044_v4, %v1156_v28  ;;  %v991_v45 = vmul.f32 %v2038_v63, %v955_v29  ;;  %v1092_v46 = vmul.f32 %v2040_v0, %v1056_v30 }
  0x8b   : > { %v487_v22 = vmul.f32 %v2019_v35, %v1054_v48  ;;  %v1123_v50 = vadd.f32 %v1091_v24, %v1022_v40  ;;  %v921_v51 = vadd.f32 %v889_v32, %v820_v42  ;;  %v720_v54 = vadd.f32 %v688_v34, %v619_v43  ;;  %v1159_v34 = vld [vmem:[#allocation2 + $0xd1] sm:$0xff] }
  0x8c   : > { %1255 = vst.msk [vmem:[%s2079_s17 + $0x28] sm:$0xff] %vm201_vm0, %v1223_v37  ;;  %v789_v47 = vmul.f32 %v2030_v49, %v1055_v15  ;;  %v1193_v27 = vmul.f32 %v2044_v4, %v1157_v25  ;;  %v890_v56 = vmul.f32 %v2033_v52, %v1156_v28  ;;  %v588_v60 = vmul.f32 %v2023_v39, %v1155_v3 }
  0x8d   : > { %v519_v59 = vadd.f32 %v487_v22, %v386_v36  ;;  %v1224_v62 = vadd.f32 %v1192_v44, %v1123_v50  ;;  %v1023_v48 = vadd.f32 %v991_v45, %v921_v51  ;;  %v387_v1 = vmul.f32 %v2015_v33, %v954_v61  ;;  %v957_v61 = vld [vmem:[#allocation2 + $0xcf] sm:$0xff] }
  0x8e   : > { %v821_v53 = vadd.f32 %v789_v47, %v720_v54  ;;  %v992_v38 = vmul.f32 %v2038_v63, %v956_v55  ;;  %v689_v7 = vmul.f32 %v2025_v41, %v955_v29  ;;  %v488_v8 = vmul.f32 %v2019_v35, %v1055_v15  ;;  %v1059_v22 = vld [vmem:[#allocation2 + $0xe8] sm:$0xff] }
  0x8f   : > { %v620_v2 = vadd.f32 %v588_v60, %v519_v59  ;;  %1256 = vst.msk [vmem:[%s2079_s17 + $0x30] sm:$0xff] %vm201_vm0, %v1224_v62  ;;  %v1124_v9 = vadd.f32 %v1092_v46, %v1023_v48  ;;  %v1093_v6 = vmul.f32 %v2040_v0, %v1057_v57  ;;  %v1194_v3 = vmul.f32 %v2044_v4, %v1158_v58  ;;  %v1160_v60 = vld [vmem:[#allocation2 + $0xe9] sm:$0xff] }
  0x90   : > { %v922_v5 = vadd.f32 %v890_v56, %v821_v53  ;;  %v790_v12 = vmul.f32 %v2030_v49, %v1056_v30  ;;  %v520_v14 = vadd.f32 %v488_v8, %v387_v1  ;;  %v589_v17 = vmul.f32 %v2023_v39, %v1156_v28  ;;  %v959_v62 = vld [vmem:[#allocation2 + $0xef] sm:$0xff] }
  0x91   : > { %v721_v11 = vadd.f32 %v689_v7, %v620_v2  ;;  %v1225_v18 = vadd.f32 %v1193_v27, %v1124_v9  ;;  %v891_v15 = vmul.f32 %v2033_v52, %v1157_v25  ;;  %v388_v20 = vmul.f32 %v2015_v33, %v955_v29  ;;  %v958_v29 = vld [vmem:[#allocation2 + $0xe7] sm:$0xff]  ;;  %v1060_v48 = vld [vmem:[#allocation2 + $0xf0] sm:$0xff] }
  0x92   : > { %v1024_v19 = vadd.f32 %v992_v38, %v922_v5  ;;  %v621_v23 = vadd.f32 %v589_v17, %v520_v14  ;;  %v690_v16 = vmul.f32 %v2025_v41, %v956_v55  ;;  %v489_v26 = vmul.f32 %v2019_v35, %v1056_v30 }
  0x93   : > { %v822_v10 = vadd.f32 %v790_v12, %v721_v11  ;;  %1257 = vst.msk [vmem:[%s2079_s17 + $0x38] sm:$0xff] %vm201_vm0, %v1225_v18  ;;  %v993_v31 = vmul.f32 %v2038_v63, %v957_v61  ;;  %v1094_v24 = vmul.f32 %v2040_v0, %v1058_v13  ;;  %v791_v28 = vmul.f32 %v2030_v49, %v1057_v57 }
  0x94   : > { %v1125_v21 = vadd.f32 %v1093_v6, %v1024_v19  ;;  %v722_v36 = vadd.f32 %v690_v16, %v621_v23  ;;  %v521_v37 = vadd.f32 %v489_v26, %v388_v20  ;;  %v590_v40 = vmul.f32 %v2023_v39, %v1157_v25  ;;  %v960_v19 = vld [vmem:[#allocation2 + $0x107] sm:$0xff] }
  0x95   : > { %v923_v32 = vadd.f32 %v891_v15, %v822_v10  ;;  %v892_v30 = vmul.f32 %v2033_v52, %v1158_v58  ;;  %v691_v43 = vmul.f32 %v2025_v41, %v957_v61  ;;  %v389_v44 = vmul.f32 %v2015_v33, %v956_v55  ;;  %v1061_v10 = vld [vmem:[#allocation2 + $0x108] sm:$0xff] }
  0x96   : > { %v1226_v42 = vadd.f32 %v1194_v3, %v1125_v21  ;;  %v823_v46 = vadd.f32 %v791_v28, %v722_v36  ;;  %v622_v50 = vadd.f32 %v590_v40, %v521_v37  ;;  %v490_v51 = vmul.f32 %v2019_v35, %v1057_v57  ;;  %v1162_v23 = vld [vmem:[#allocation2 + $0x109] sm:$0xff] }
  0x97   : > { %v1025_v45 = vadd.f32 %v993_v31, %v923_v32  ;;  %v1195_v54 = vmul.f32 %v2044_v4, %v1159_v34  ;;  %v994_v47 = vmul.f32 %v2038_v63, %v958_v29  ;;  %v792_v25 = vmul.f32 %v2030_v49, %v1058_v13 }
  0x98   : > { %1258 = vst.msk [vmem:[%s2079_s17 + $0x40] sm:$0xff] %vm201_vm0, %v1226_v42  ;;  %v591_v27 = vmul.f32 %v2023_v39, %v1158_v58  ;;  %v924_v59 = vadd.f32 %v892_v30, %v823_v46  ;;  %v723_v55 = vadd.f32 %v691_v43, %v622_v50  ;;  %v522_v53 = vadd.f32 %v490_v51, %v389_v44  ;;  %v1161_v58 = vld [vmem:[#allocation2 + $0xf1] sm:$0xff] }
  0x99   : > { %v1126_v56 = vadd.f32 %v1094_v24, %v1025_v45  ;;  %v1095_v57 = vmul.f32 %v2040_v0, %v1059_v22  ;;  %v893_v1 = vmul.f32 %v2033_v52, %v1159_v34  ;;  %v692_v38 = vmul.f32 %v2025_v41, %v958_v29  ;;  %v1062_v45 = vld [vmem:[#allocation2 + $0x110] sm:$0xff] }
  0x9a   : > { %v390_v2 = vmul.f32 %v2015_v33, %v957_v61  ;;  %v1026_v8 = vadd.f32 %v994_v47, %v924_v59  ;;  %v824_v9 = vadd.f32 %v792_v25, %v723_v55  ;;  %v623_v5 = vadd.f32 %v591_v27, %v522_v53 }
  0x9b   : > { %v1227_v7 = vadd.f32 %v1195_v54, %v1126_v56  ;;  %v1196_v6 = vmul.f32 %v2044_v4, %v1160_v60  ;;  %v995_v3 = vmul.f32 %v2038_v63, %v959_v62  ;;  %v1096_v11 = vmul.f32 %v2040_v0, %v1060_v48 }
  0x9c   : > { %v491_v12 = vmul.f32 %v2019_v35, %v1058_v13  ;;  %v1127_v14 = vadd.f32 %v1095_v57, %v1026_v8  ;;  %v925_v17 = vadd.f32 %v893_v1, %v824_v9  ;;  %v724_v18 = vadd.f32 %v692_v38, %v623_v5  ;;  %v1163_v38 = vld [vmem:[#allocation2 + $0x111] sm:$0xff] }
  0x9d   : > { %1259 = vst.msk [vmem:[%s2079_s17 + $0x48] sm:$0xff] %vm201_vm0, %v1227_v7  ;;  %v793_v61 = vmul.f32 %v2030_v49, %v1059_v22  ;;  %v1197_v15 = vmul.f32 %v2044_v4, %v1161_v58  ;;  %v894_v20 = vmul.f32 %v2033_v52, %v1160_v60  ;;  %v592_v26 = vmul.f32 %v2023_v39, %v1159_v34 }
  0x9e   : > { %v523_v16 = vadd.f32 %v491_v12, %v390_v2  ;;  %v1228_v21 = vadd.f32 %v1196_v6, %v1127_v14  ;;  %v1027_v13 = vadd.f32 %v995_v3, %v925_v17  ;;  %v391_v24 = vmul.f32 %v2015_v33, %v958_v29  ;;  %v961_v29 = vld [vmem:[#allocation2 + $0x10f] sm:$0xff] }
  0x9f   : > { %v825_v31 = vadd.f32 %v793_v61, %v724_v18  ;;  %v996_v28 = vmul.f32 %v2038_v63, %v960_v19  ;;  %v693_v36 = vmul.f32 %v2025_v41, %v959_v62  ;;  %v492_v37 = vmul.f32 %v2019_v35, %v1059_v22  ;;  %v1063_v12 = vld [vmem:[#allocation2 + $0x128] sm:$0xff] }
  0xa0   : > { %v624_v32 = vadd.f32 %v592_v26, %v523_v16  ;;  %1260 = vst.msk [vmem:[%s2079_s17 + $0x50] sm:$0xff] %vm201_vm0, %v1228_v21  ;;  %v1128_v40 = vadd.f32 %v1096_v11, %v1027_v13  ;;  %v1097_v30 = vmul.f32 %v2040_v0, %v1061_v10  ;;  %v1198_v34 = vmul.f32 %v2044_v4, %v1162_v23  ;;  %v1164_v26 = vld [vmem:[#allocation2 + $0x129] sm:$0xff] }
  0xa1   : > { %v926_v42 = vadd.f32 %v894_v20, %v825_v31  ;;  %v794_v44 = vmul.f32 %v2030_v49, %v1060_v48  ;;  %v524_v46 = vadd.f32 %v492_v37, %v391_v24  ;;  %v593_v50 = vmul.f32 %v2023_v39, %v1160_v60  ;;  %v963_v21 = vld [vmem:[#allocation2 + $0x12f] sm:$0xff] }
  0xa2   : > { %v725_v43 = vadd.f32 %v693_v36, %v624_v32  ;;  %v1229_v51 = vadd.f32 %v1197_v15, %v1128_v40  ;;  %v895_v22 = vmul.f32 %v2033_v52, %v1161_v58  ;;  %v392_v47 = vmul.f32 %v2015_v33, %v959_v62  ;;  %v962_v62 = vld [vmem:[#allocation2 + $0x127] sm:$0xff]  ;;  %v1064_v13 = vld [vmem:[#allocation2 + $0x130] sm:$0xff] }
  0xa3   : > { %v1028_v54 = vadd.f32 %v996_v28, %v926_v42  ;;  %v625_v27 = vadd.f32 %v593_v50, %v524_v46  ;;  %v694_v56 = vmul.f32 %v2025_v41, %v960_v19  ;;  %v493_v59 = vmul.f32 %v2019_v35, %v1060_v48 }
  0xa4   : > { %v826_v25 = vadd.f32 %v794_v44, %v725_v43  ;;  %1261 = vst.msk [vmem:[%s2079_s17 + $0x58] sm:$0xff] %vm201_vm0, %v1229_v51  ;;  %v997_v53 = vmul.f32 %v2038_v63, %v961_v29  ;;  %v1098_v57 = vmul.f32 %v2040_v0, %v1062_v45  ;;  %v795_v60 = vmul.f32 %v2030_v49, %v1061_v10 }
  0xa5   : > { %v1129_v55 = vadd.f32 %v1097_v30, %v1028_v54  ;;  %v726_v2 = vadd.f32 %v694_v56, %v625_v27  ;;  %v525_v7 = vadd.f32 %v493_v59, %v392_v47  ;;  %v594_v8 = vmul.f32 %v2023_v39, %v1161_v58  ;;  %v964_v54 = vld [vmem:[#allocation2 + $0x147] sm:$0xff] }
  0xa6   : > { %v927_v1 = vadd.f32 %v895_v22, %v826_v25  ;;  %v896_v48 = vmul.f32 %v2033_v52, %v1162_v23  ;;  %v695_v5 = vmul.f32 %v2025_v41, %v961_v29  ;;  %v393_v6 = vmul.f32 %v2015_v33, %v960_v19  ;;  %v1065_v25 = vld [vmem:[#allocation2 + $0x148] sm:$0xff] }
  0xa7   : > { %v1230_v9 = vadd.f32 %v1198_v34, %v1129_v55  ;;  %v827_v11 = vadd.f32 %v795_v60, %v726_v2  ;;  %v626_v14 = vadd.f32 %v594_v8, %v525_v7  ;;  %v494_v17 = vmul.f32 %v2019_v35, %v1061_v10  ;;  %v1166_v27 = vld [vmem:[#allocation2 + $0x149] sm:$0xff] }
  0xa8   : > { %v1029_v3 = vadd.f32 %v997_v53, %v927_v1  ;;  %v1199_v18 = vmul.f32 %v2044_v4, %v1163_v38  ;;  %v998_v61 = vmul.f32 %v2038_v63, %v962_v62  ;;  %v796_v58 = vmul.f32 %v2030_v49, %v1062_v45 }
  0xa9   : > { %1262 = vst.msk [vmem:[%s2079_s17 + $0x60] sm:$0xff] %vm201_vm0, %v1230_v9  ;;  %v595_v15 = vmul.f32 %v2023_v39, %v1162_v23  ;;  %v928_v16 = vadd.f32 %v896_v48, %v827_v11  ;;  %v727_v19 = vadd.f32 %v695_v5, %v626_v14  ;;  %v526_v31 = vadd.f32 %v494_v17, %v393_v6  ;;  %v1165_v23 = vld [vmem:[#allocation2 + $0x131] sm:$0xff] }
  0xaa   : > { %v1130_v20 = vadd.f32 %v1098_v57, %v1029_v3  ;;  %v1099_v10 = vmul.f32 %v2040_v0, %v1063_v12  ;;  %v897_v24 = vmul.f32 %v2033_v52, %v1163_v38  ;;  %v696_v28 = vmul.f32 %v2025_v41, %v962_v62  ;;  %v1066_v3 = vld [vmem:[#allocation2 + $0x150] sm:$0xff] }
  0xab   : > { %v394_v32 = vmul.f32 %v2015_v33, %v961_v29  ;;  %v1030_v37 = vadd.f32 %v998_v61, %v928_v16  ;;  %v828_v40 = vadd.f32 %v796_v58, %v727_v19  ;;  %v627_v42 = vadd.f32 %v595_v15, %v526_v31 }
  0xac   : > { %v1231_v36 = vadd.f32 %v1199_v18, %v1130_v20  ;;  %v1200_v30 = vmul.f32 %v2044_v4, %v1164_v26  ;;  %v999_v34 = vmul.f32 %v2038_v63, %v963_v21  ;;  %v1100_v43 = vmul.f32 %v2040_v0, %v1064_v13 }
  0xad   : > { %v495_v44 = vmul.f32 %v2019_v35, %v1062_v45  ;;  %v1131_v46 = vadd.f32 %v1099_v10, %v1030_v37  ;;  %v929_v50 = vadd.f32 %v897_v24, %v828_v40  ;;  %v728_v51 = vadd.f32 %v696_v28, %v627_v42  ;;  %v1167_v28 = vld [vmem:[#allocation2 + $0x151] sm:$0xff] }
  0xae   : > { %1263 = vst.msk [vmem:[%s2079_s17 + $0x68] sm:$0xff] %vm201_vm0, %v1231_v36  ;;  %v797_v29 = vmul.f32 %v2030_v49, %v1063_v12  ;;  %v1201_v22 = vmul.f32 %v2044_v4, %v1165_v23  ;;  %v898_v47 = vmul.f32 %v2033_v52, %v1164_v26  ;;  %v596_v59 = vmul.f32 %v2023_v39, %v1163_v38 }
  0xaf   : > { %v527_v56 = vadd.f32 %v495_v44, %v394_v32  ;;  %v1232_v55 = vadd.f32 %v1200_v30, %v1131_v46  ;;  %v1031_v45 = vadd.f32 %v999_v34, %v929_v50  ;;  %v395_v57 = vmul.f32 %v2015_v33, %v962_v62  ;;  %v965_v62 = vld [vmem:[#allocation2 + $0x14f] sm:$0xff] }
  0xb0   : > { %v829_v53 = vadd.f32 %v797_v29, %v728_v51  ;;  %v1000_v60 = vmul.f32 %v2038_v63, %v964_v54  ;;  %v697_v2 = vmul.f32 %v2025_v41, %v963_v21  ;;  %v496_v7 = vmul.f32 %v2019_v35, %v1063_v12  ;;  %v1067_v44 = vld [vmem:[#allocation2 + $0x168] sm:$0xff] }
  0xb1   : > { %v628_v1 = vadd.f32 %v596_v59, %v527_v56  ;;  %1264 = vst.msk [vmem:[%s2079_s17 + $0x70] sm:$0xff] %vm201_vm0, %v1232_v55  ;;  %v1132_v8 = vadd.f32 %v1100_v43, %v1031_v45  ;;  %v1101_v48 = vmul.f32 %v2040_v0, %v1065_v25  ;;  %v1202_v38 = vmul.f32 %v2044_v4, %v1166_v27  ;;  %v1168_v59 = vld [vmem:[#allocation2 + $0x169] sm:$0xff] }
  0xb2   : > { %v930_v9 = vadd.f32 %v898_v47, %v829_v53  ;;  %v798_v6 = vmul.f32 %v2030_v49, %v1064_v13  ;;  %v528_v11 = vadd.f32 %v496_v7, %v395_v57  ;;  %v597_v14 = vmul.f32 %v2023_v39, %v1164_v26  ;;  %v967_v55 = vld [vmem:[#allocation2 + $0x16f] sm:$0xff] }
  0xb3   : > { %v729_v5 = vadd.f32 %v697_v2, %v628_v1  ;;  %v1233_v17 = vadd.f32 %v1201_v22, %v1132_v8  ;;  %v899_v12 = vmul.f32 %v2033_v52, %v1165_v23  ;;  %v396_v61 = vmul.f32 %v2015_v33, %v963_v21  ;;  %v966_v21 = vld [vmem:[#allocation2 + $0x167] sm:$0xff]  ;;  %v1068_v45 = vld [vmem:[#allocation2 + $0x170] sm:$0xff] }
  0xb4   : > { %v1032_v18 = vadd.f32 %v1000_v60, %v930_v9  ;;  %v629_v15 = vadd.f32 %v597_v14, %v528_v11  ;;  %v698_v20 = vmul.f32 %v2025_v41, %v964_v54  ;;  %v497_v16 = vmul.f32 %v2019_v35, %v1064_v13 }
  0xb5   : > { %v830_v58 = vadd.f32 %v798_v6, %v729_v5  ;;  %1265 = vst.msk [vmem:[%s2079_s17 + $0x78] sm:$0xff] %vm201_vm0, %v1233_v17  ;;  %v1001_v31 = vmul.f32 %v2038_v63, %v965_v62  ;;  %v1102_v10 = vmul.f32 %v2040_v0, %v1066_v3  ;;  %v799_v26 = vmul.f32 %v2030_v49, %v1065_v25 }
  0xb6   : > { %v1133_v19 = vadd.f32 %v1101_v48, %v1032_v18  ;;  %v730_v32 = vadd.f32 %v698_v20, %v629_v15  ;;  %v529_v36 = vadd.f32 %v497_v16, %v396_v61  ;;  %v598_v37 = vmul.f32 %v2023_v39, %v1165_v23  ;;  %v968_v18 = vld [vmem:[#allocation2 + $0x187] sm:$0xff] }
  0xb7   : > { %v931_v24 = vadd.f32 %v899_v12, %v830_v58  ;;  %v900_v13 = vmul.f32 %v2033_v52, %v1166_v27  ;;  %v699_v42 = vmul.f32 %v2025_v41, %v965_v62  ;;  %v397_v30 = vmul.f32 %v2015_v33, %v964_v54  ;;  %v1069_v58 = vld [vmem:[#allocation2 + $0x188] sm:$0xff] }
  0xb8   : > { %v1234_v40 = vadd.f32 %v1202_v38, %v1133_v19  ;;  %v831_v43 = vadd.f32 %v799_v26, %v730_v32  ;;  %v630_v46 = vadd.f32 %v598_v37, %v529_v36  ;;  %v498_v50 = vmul.f32 %v2019_v35, %v1065_v25  ;;  %v1170_v15 = vld [vmem:[#allocation2 + $0x189] sm:$0xff] }
  0xb9   : > { %v1033_v34 = vadd.f32 %v1001_v31, %v931_v24  ;;  %v1203_v51 = vmul.f32 %v2044_v4, %v1167_v28  ;;  %v1002_v29 = vmul.f32 %v2038_v63, %v966_v21  ;;  %v800_v23 = vmul.f32 %v2030_v49, %v1066_v3 }
  0xba   : > { %1266 = vst.msk [vmem:[%s2079_s17 + $0x80] sm:$0xff] %vm201_vm0, %v1234_v40  ;;  %v599_v22 = vmul.f32 %v2023_v39, %v1166_v27  ;;  %v932_v56 = vadd.f32 %v900_v13, %v831_v43  ;;  %v731_v54 = vadd.f32 %v699_v42, %v630_v46  ;;  %v530_v53 = vadd.f32 %v498_v50, %v397_v30  ;;  %v1169_v27 = vld [vmem:[#allocation2 + $0x171] sm:$0xff] }
  0xbb   : > { %v1134_v47 = vadd.f32 %v1102_v10, %v1033_v34  ;;  %v1103_v25 = vmul.f32 %v2040_v0, %v1067_v44  ;;  %v901_v57 = vmul.f32 %v2033_v52, %v1167_v28  ;;  %v700_v60 = vmul.f32 %v2025_v41, %v966_v21  ;;  %v1070_v34 = vld [vmem:[#allocation2 + $0x190] sm:$0xff] }
  0xbc   : > { %v398_v1 = vmul.f32 %v2015_v33, %v965_v62  ;;  %v1034_v7 = vadd.f32 %v1002_v29, %v932_v56  ;;  %v832_v8 = vadd.f32 %v800_v23, %v731_v54  ;;  %v631_v9 = vadd.f32 %v599_v22, %v530_v53 }
  0xbd   : > { %v1235_v2 = vadd.f32 %v1203_v51, %v1134_v47  ;;  %v1204_v48 = vmul.f32 %v2044_v4, %v1168_v59  ;;  %v1003_v38 = vmul.f32 %v2038_v63, %v967_v55  ;;  %v1104_v5 = vmul.f32 %v2040_v0, %v1068_v45 }
  0xbe   : > { %v499_v6 = vmul.f32 %v2019_v35, %v1066_v3  ;;  %v1135_v11 = vadd.f32 %v1103_v25, %v1034_v7  ;;  %v933_v14 = vadd.f32 %v901_v57, %v832_v8  ;;  %v732_v17 = vadd.f32 %v700_v60, %v631_v9  ;;  %v1171_v60 = vld [vmem:[#allocation2 + $0x191] sm:$0xff] }
  0xbf   : > { %1267 = vst.msk [vmem:[%s2079_s17 + $0x88] sm:$0xff] %vm201_vm0, %v1235_v2  ;;  %v801_v62 = vmul.f32 %v2030_v49, %v1067_v44  ;;  %v1205_v12 = vmul.f32 %v2044_v4, %v1169_v27  ;;  %v902_v61 = vmul.f32 %v2033_v52, %v1168_v59  ;;  %v600_v16 = vmul.f32 %v2023_v39, %v1167_v28 }
  0xc0   : > { %v531_v20 = vadd.f32 %v499_v6, %v398_v1  ;;  %v1236_v19 = vadd.f32 %v1204_v48, %v1135_v11  ;;  %v1035_v3 = vadd.f32 %v1003_v38, %v933_v14  ;;  %v399_v10 = vmul.f32 %v2015_v33, %v966_v21  ;;  %v969_v21 = vld [vmem:[#allocation2 + $0x18f] sm:$0xff] }
  0xc1   : > { %v833_v31 = vadd.f32 %v801_v62, %v732_v17  ;;  %v1004_v26 = vmul.f32 %v2038_v63, %v968_v18  ;;  %v701_v32 = vmul.f32 %v2025_v41, %v967_v55  ;;  %v500_v36 = vmul.f32 %v2019_v35, %v1067_v44  ;;  %v1071_v6 = vld [vmem:[#allocation2 + $0x1a8] sm:$0xff] }
  0xc2   : > { %v632_v24 = vadd.f32 %v600_v16, %v531_v20  ;;  %1268 = vst.msk [vmem:[%s2079_s17 + $0x90] sm:$0xff] %vm201_vm0, %v1236_v19  ;;  %v1136_v37 = vadd.f32 %v1104_v5, %v1035_v3  ;;  %v1105_v13 = vmul.f32 %v2040_v0, %v1069_v58  ;;  %v1206_v28 = vmul.f32 %v2044_v4, %v1170_v15  ;;  %v1172_v16 = vld [vmem:[#allocation2 + $0x1a9] sm:$0xff] }
  0xc3   : > { %v934_v40 = vadd.f32 %v902_v61, %v833_v31  ;;  %v802_v30 = vmul.f32 %v2030_v49, %v1068_v45  ;;  %v532_v43 = vadd.f32 %v500_v36, %v399_v10  ;;  %v601_v46 = vmul.f32 %v2023_v39, %v1168_v59  ;;  %v1072_v19 = vld [vmem:[#allocation2 + $0x1b0] sm:$0xff]  ;;  %v2312_v10 = vld [vmem:[#allocation6] ss:$0 sm:$0xff] }
  0xc4   : > { %v733_v42 = vadd.f32 %v701_v32, %v632_v24  ;;  %v1237_v50 = vadd.f32 %v1205_v12, %v1136_v37  ;;  %v903_v44 = vmul.f32 %v2033_v52, %v1169_v27  ;;  %v400_v29 = vmul.f32 %v2015_v33, %v967_v55  ;;  %v970_v55 = vld [vmem:[#allocation2 + $0x1a7] sm:$0xff]  ;;  %v2315_v24 = vld [vmem:[#allocation2 + $0x1b1] sm:$0xff] }
  0xc5   : > { %v1036_v51 = vadd.f32 %v1004_v26, %v934_v40  ;;  %v633_v22 = vadd.f32 %v601_v46, %v532_v43  ;;  %v702_v47 = vmul.f32 %v2025_v41, %v968_v18  ;;  %v501_v56 = vmul.f32 %v2019_v35, %v1068_v45  ;;  %v972_v43 = vld [vmem:[#allocation2 + $0x1c7] sm:$0xff] }
  0xc6   : > { %v834_v23 = vadd.f32 %v802_v30, %v733_v42  ;;  %1269 = vst.msk [vmem:[%s2079_s17 + $0x98] sm:$0xff] %vm201_vm0, %v1237_v50  ;;  %v1005_v53 = vmul.f32 %v2038_v63, %v969_v21  ;;  %v1106_v25 = vmul.f32 %v2040_v0, %v1070_v34  ;;  %v803_v59 = vmul.f32 %v2030_v49, %v1069_v58  ;;  %v2325_v30 = vld [vmem:[#allocation6 + $0x4] ss:$0 sm:$0xff]  ;;  %v2330_v50 = vld [vmem:[#allocation6 + $0x5] ss:$0 sm:$0xff] }
  0xc7   : > { %v1137_v54 = vadd.f32 %v1105_v13, %v1036_v51  ;;  %v734_v1 = vadd.f32 %v702_v47, %v633_v22  ;;  %v533_v2 = vadd.f32 %v501_v56, %v400_v29  ;;  %v602_v7 = vmul.f32 %v2023_v39, %v1169_v27  ;;  %v2320_v13 = vld [vmem:[#allocation6 + $0x1] ss:$0 sm:$0xff]  ;;  %v1073_v51 = vld [vmem:[#allocation2 + $0x1c8] sm:$0xff]  ;;  %v2333_v29 = vld [vmem:[#allocation6 + $0x2] ss:$0 sm:$0xff] }
  0xc8   : > { %v935_v57 = vadd.f32 %v903_v44, %v834_v23  ;;  %v904_v45 = vmul.f32 %v2033_v52, %v1170_v15  ;;  %v703_v9 = vmul.f32 %v2025_v41, %v969_v21  ;;  %v401_v48 = vmul.f32 %v2015_v33, %v968_v18  ;;  %v971_v18 = vld [vmem:[#allocation2 + $0x1af] sm:$0xff] }
  0xc9   : > { %v1238_v8 = vadd.f32 %v1206_v28, %v1137_v54  ;;  %v835_v5 = vadd.f32 %v803_v59, %v734_v1  ;;  %v634_v11 = vadd.f32 %v602_v7, %v533_v2  ;;  %v502_v14 = vmul.f32 %v2019_v35, %v1069_v58  ;;  %v2344_v7 = vld [vmem:[#allocation6 + $0x7] ss:$0 sm:$0xff] }
  0xca   : > { %v1037_v38 = vadd.f32 %v1005_v53, %v935_v57  ;;  %v1207_v17 = vmul.f32 %v2044_v4, %v1171_v60  ;;  %v1006_v62 = vmul.f32 %v2038_v63, %v970_v55  ;;  %v804_v27 = vmul.f32 %v2030_v49, %v1070_v34 }
  0xcb   : > { %1270 = vst.msk [vmem:[%s2079_s17 + $0xa0] sm:$0xff] %vm201_vm0, %v1238_v8  ;;  %v603_v12 = vmul.f32 %v2023_v39, %v1170_v15  ;;  %v936_v20 = vadd.f32 %v904_v45, %v835_v5  ;;  %v735_v33 = vadd.f32 %v703_v9, %v634_v11  ;;  %v534_v3 = vadd.f32 %v502_v14, %v401_v48  ;;  %v2347_v8 = vld [vmem:[#allocation6 + $0x8] ss:$0 sm:$0xff]  ;;  %v973_v9 = vld [vmem:[#allocation2 + $0x1cf] sm:$0xff] }
  0xcc   : > { %v1138_v61 = vadd.f32 %v1106_v25, %v1037_v38  ;;  %v1107_v35 = vmul.f32 %v2040_v0, %v1071_v6  ;;  %v905_v58 = vmul.f32 %v2033_v52, %v1171_v60  ;;  %v704_v31 = vmul.f32 %v2025_v41, %v970_v55  ;;  %v2338_v25 = vld [vmem:[#allocation6 + $0x3] ss:$0 sm:$0xff]  ;;  %v1074_v48 = vld [vmem:[#allocation2 + $0x1d0] sm:$0xff] }
  0xcd   : > { %v402_v49 = vmul.f32 %v2312_v10, %v969_v21  ;;  %v1038_v39 = vadd.f32 %v1006_v62, %v936_v20  ;;  %v836_v15 = vadd.f32 %v804_v27, %v735_v33  ;;  %v635_v32 = vadd.f32 %v603_v12, %v534_v3  ;;  %v2359_v33 = vld [vmem:[#allocation6 + $0x6] ss:$0 sm:$0xff] }
  0xce   : > { %v1239_v26 = vadd.f32 %v1207_v17, %v1138_v61  ;;  %v1208_v36 = vmul.f32 %v2044_v4, %v1172_v16  ;;  %v1007_v37 = vmul.f32 %v2038_v63, %v971_v18  ;;  %v1108_v40 = vmul.f32 %v2040_v0, %v1072_v19 }
  0xcf   : > { %v503_v41 = vmul.f32 %v2320_v13, %v1070_v34  ;;  %v1139_v52 = vadd.f32 %v1107_v35, %v1038_v39  ;;  %v937_v28 = vadd.f32 %v905_v58, %v836_v15  ;;  %v736_v42 = vadd.f32 %v704_v31, %v635_v32  ;;  %v1174_v34 = vld [vmem:[#allocation2 + $0x1c9] sm:$0xff] }
  0xd0   : > { %1271 = vst.msk [vmem:[%s2079_s17 + $0xa8] sm:$0xff] %vm201_vm0, %v1239_v26  ;;  %v805_v21 = vmul.f32 %v2325_v30, %v1071_v6  ;;  %v1209_v46 = vmul.f32 %v2044_v4, %v2315_v24  ;;  %v906_v0 = vmul.f32 %v2330_v50, %v1172_v16  ;;  %v604_v23 = vmul.f32 %v2333_v29, %v1171_v60 }
  0xd1   : > { %v535_v44 = vadd.f32 %v503_v41, %v402_v49  ;;  %v1240_v22 = vadd.f32 %v1208_v36, %v1139_v52  ;;  %v1039_v47 = vadd.f32 %v1007_v37, %v937_v28  ;;  %v403_v54 = vmul.f32 %v2312_v10, %v970_v55  ;;  %v974_v49 = vld [vmem:[#allocation2 + $0x1e7] sm:$0xff] }
  0xd2   : > { %v837_v56 = vadd.f32 %v805_v21, %v736_v42  ;;  %v1008_v53 = vmul.f32 %v2038_v63, %v972_v43  ;;  %v705_v59 = vmul.f32 %v2338_v25, %v971_v18  ;;  %v504_v57 = vmul.f32 %v2320_v13, %v1071_v6  ;;  %v1075_v41 = vld [vmem:[#allocation2 + $0x1e8] sm:$0xff] }
  0xd3   : > { %v636_v4 = vadd.f32 %v604_v23, %v535_v44  ;;  %1272 = vst.msk [vmem:[%s2079_s17 + $0xb0] sm:$0xff] %vm201_vm0, %v1240_v22  ;;  %v1140_v1 = vadd.f32 %v1108_v40, %v1039_v47  ;;  %v1109_v60 = vmul.f32 %v2344_v7, %v1073_v51  ;;  %v1210_v63 = vmul.f32 %v2347_v8, %v1174_v34  ;;  %v1176_v23 = vld [vmem:[#allocation2 + $0x1e9] sm:$0xff] }
  0xd4   : > { %v938_v2 = vadd.f32 %v906_v0, %v837_v56  ;;  %v806_v45 = vmul.f32 %v2325_v30, %v1072_v19  ;;  %v536_v38 = vadd.f32 %v504_v57, %v403_v54  ;;  %v605_v5 = vmul.f32 %v2333_v29, %v1172_v16  ;;  %v975_v22 = vld [vmem:[#allocation2 + $0x1ef] sm:$0xff] }
  0xd5   : > { %v737_v55 = vadd.f32 %v705_v59, %v636_v4  ;;  %v1241_v6 = vadd.f32 %v1209_v46, %v1140_v1  ;;  %v907_v14 = vmul.f32 %v2330_v50, %v2315_v24  ;;  %v404_v17 = vmul.f32 %v2312_v10, %v971_v18  ;;  %v1175_v18 = vld [vmem:[#allocation2 + $0x1d1] sm:$0xff] }
  0xd6   : > { %v1040_v11 = vadd.f32 %v1008_v53, %v938_v2  ;;  %v637_v27 = vadd.f32 %v605_v5, %v536_v38  ;;  %v706_v12 = vmul.f32 %v2338_v25, %v972_v43  ;;  %v505_v61 = vmul.f32 %v2320_v13, %v1072_v19  ;;  %v1076_v47 = vld [vmem:[#allocation2 + $0x1f0] sm:$0xff] }
  0xd7   : > { %v838_v62 = vadd.f32 %v806_v45, %v737_v55  ;;  %1273 = vst.msk [vmem:[%s2079_s17 + $0xb8] sm:$0xff] %vm201_vm0, %v1241_v6  ;;  %v1009_v16 = vmul.f32 %v2359_v33, %v973_v9  ;;  %v1110_v3 = vmul.f32 %v2344_v7, %v1074_v48  ;;  %v807_v35 = vmul.f32 %v2325_v30, %v1073_v51 }
  0xd8   : > { %v1141_v20 = vadd.f32 %v1109_v60, %v1040_v11  ;;  %v738_v31 = vadd.f32 %v706_v12, %v637_v27  ;;  %v537_v26 = vadd.f32 %v505_v61, %v404_v17  ;;  %v606_v19 = vmul.f32 %v2333_v29, %v2315_v24  ;;  %v976_v11 = vld [vmem:[#allocation2 + $0x207] sm:$0xff] }
  0xd9   : > { %v939_v58 = vadd.f32 %v907_v14, %v838_v62  ;;  %v908_v15 = vmul.f32 %v2330_v50, %v1174_v34  ;;  %v707_v32 = vmul.f32 %v2338_v25, %v973_v9  ;;  %v405_v36 = vmul.f32 %v2312_v10, %v972_v43  ;;  %v1077_v62 = vld [vmem:[#allocation2 + $0x208] sm:$0xff] }
  0xda   : > { %v1242_v39 = vadd.f32 %v1210_v63, %v1141_v20  ;;  %v839_v40 = vadd.f32 %v807_v35, %v738_v31  ;;  %v638_v52 = vadd.f32 %v606_v19, %v537_v26  ;;  %v506_v28 = vmul.f32 %v2320_v13, %v1073_v51  ;;  %v1178_v35 = vld [vmem:[#allocation2 + $0x209] sm:$0xff] }
  0xdb   : > { %v1041_v37 = vadd.f32 %v1009_v16, %v939_v58  ;;  %v1211_v42 = vmul.f32 %v2347_v8, %v1175_v18  ;;  %v1010_v21 = vmul.f32 %v2359_v33, %v974_v49  ;;  %v808_v24 = vmul.f32 %v2325_v30, %v1074_v48 }
  0xdc   : > { %1274 = vst.msk [vmem:[%s2079_s17 + $0xc0] sm:$0xff] %vm201_vm0, %v1242_v39  ;;  %v607_v46 = vmul.f32 %v2333_v29, %v1174_v34  ;;  %v940_v44 = vadd.f32 %v908_v15, %v839_v40  ;;  %v739_v43 = vadd.f32 %v707_v32, %v638_v52  ;;  %v538_v56 = vadd.f32 %v506_v28, %v405_v36  ;;  %v1177_v34 = vld [vmem:[#allocation2 + $0x1f1] sm:$0xff] }
  0xdd   : > { %v1142_v0 = vadd.f32 %v1110_v3, %v1041_v37  ;;  %v1111_v51 = vmul.f32 %v2344_v7, %v1075_v41  ;;  %v909_v54 = vmul.f32 %v2330_v50, %v1175_v18  ;;  %v708_v53 = vmul.f32 %v2338_v25, %v974_v49  ;;  %v977_v36 = vld [vmem:[#allocation2 + $0x20f] sm:$0xff] }
  0xde   : > { %v406_v4 = vmul.f32 %v2312_v10, %v973_v9  ;;  %v1042_v57 = vadd.f32 %v1010_v21, %v940_v44  ;;  %v840_v1 = vadd.f32 %v808_v24, %v739_v43  ;;  %v639_v2 = vadd.f32 %v607_v46, %v538_v56  ;;  %v1078_v46 = vld [vmem:[#allocation2 + $0x210] sm:$0xff] }
  0xdf   : > { %v1243_v59 = vadd.f32 %v1211_v42, %v1142_v0  ;;  %v1212_v60 = vmul.f32 %v2347_v8, %v1176_v23  ;;  %v1011_v63 = vmul.f32 %v2359_v33, %v975_v22  ;;  %v1112_v55 = vmul.f32 %v2344_v7, %v1076_v47 }
  0xe0   : > { %v507_v45 = vmul.f32 %v2320_v13, %v1074_v48  ;;  %v1143_v38 = vadd.f32 %v1111_v51, %v1042_v57  ;;  %v941_v5 = vadd.f32 %v909_v54, %v840_v1  ;;  %v740_v6 = vadd.f32 %v708_v53, %v639_v2  ;;  %v978_v51 = vld [vmem:[#allocation2 + $0x227] sm:$0xff] }
  0xe1   : > { %1275 = vst.msk [vmem:[%s2079_s17 + $0xc8] sm:$0xff] %vm201_vm0, %v1243_v59  ;;  %v809_v9 = vmul.f32 %v2325_v30, %v1075_v41  ;;  %v1213_v14 = vmul.f32 %v2347_v8, %v1177_v34  ;;  %v910_v17 = vmul.f32 %v2330_v50, %v1176_v23  ;;  %v608_v12 = vmul.f32 %v2333_v29, %v1175_v18 }
  0xe2   : > { %v539_v27 = vadd.f32 %v507_v45, %v406_v4  ;;  %v1244_v61 = vadd.f32 %v1212_v60, %v1143_v38  ;;  %v1043_v20 = vadd.f32 %v1011_v63, %v941_v5  ;;  %v407_v16 = vmul.f32 %v2312_v10, %v974_v49  ;;  %v1079_v63 = vld [vmem:[#allocation2 + $0x228] sm:$0xff] }
  0xe3   : > { %v841_v48 = vadd.f32 %v809_v9, %v740_v6  ;;  %v1012_v3 = vmul.f32 %v2359_v33, %v976_v11  ;;  %v709_v31 = vmul.f32 %v2338_v25, %v975_v22  ;;  %v508_v26 = vmul.f32 %v2320_v13, %v1075_v41  ;;  %v1180_v9 = vld [vmem:[#allocation2 + $0x229] sm:$0xff] }
  0xe4   : > { %v640_v58 = vadd.f32 %v608_v12, %v539_v27  ;;  %1276 = vst.msk [vmem:[%s2079_s17 + $0xd0] sm:$0xff] %vm201_vm0, %v1244_v61  ;;  %v1144_v19 = vadd.f32 %v1112_v55, %v1043_v20  ;;  %v1113_v15 = vmul.f32 %v2344_v7, %v1077_v62  ;;  %v810_v18 = vmul.f32 %v2325_v30, %v1076_v47  ;;  %v1080_v12 = vld [vmem:[#allocation2 + $0x230] sm:$0xff] }
  0xe5   : > { %v942_v39 = vadd.f32 %v910_v17, %v841_v48  ;;  %v540_v49 = vadd.f32 %v508_v26, %v407_v16  ;;  %v609_v37 = vmul.f32 %v2333_v29, %v1176_v23  ;;  %v710_v40 = vmul.f32 %v2338_v25, %v976_v11  ;;  %v1181_v48 = vld [vmem:[#allocation2 + $0x231] sm:$0xff] }
  0xe6   : > { %v741_v32 = vadd.f32 %v709_v31, %v640_v58  ;;  %v1245_v52 = vadd.f32 %v1213_v14, %v1144_v19  ;;  %v1214_v41 = vmul.f32 %v2347_v8, %v1178_v35  ;;  %v408_v42 = vmul.f32 %v2312_v10, %v975_v22  ;;  %v1179_v10 = vld [vmem:[#allocation2 + $0x211] sm:$0xff] }
  0xe7   : > { %v1044_v28 = vadd.f32 %v1012_v3, %v942_v39  ;;  %v911_v24 = vmul.f32 %v2330_v50, %v1177_v34  ;;  %v641_v0 = vadd.f32 %v609_v37, %v540_v49  ;;  %v509_v44 = vmul.f32 %v2320_v13, %v1076_v47 }
  0xe8   : > { %v842_v21 = vadd.f32 %v810_v18, %v741_v32  ;;  %1277 = vst.msk [vmem:[%s2079_s17 + $0xd8] sm:$0xff] %vm201_vm0, %v1245_v52  ;;  %v1013_v23 = vmul.f32 %v2359_v33, %v977_v36  ;;  %v811_v56 = vmul.f32 %v2325_v30, %v1077_v62  ;;  %v610_v54 = vmul.f32 %v2333_v29, %v1177_v34  ;;  %v979_v34 = vld [vmem:[#allocation2 + $0x22f] sm:$0xff] }
  0xe9   : > { %v1145_v43 = vadd.f32 %v1113_v15, %v1044_v28  ;;  %v742_v22 = vadd.f32 %v710_v40, %v641_v0  ;;  %v541_v4 = vadd.f32 %v509_v44, %v408_v42  ;;  %v711_v59 = vmul.f32 %v2338_v25, %v977_v36 }
  0xea   : > { %v943_v53 = vadd.f32 %v911_v24, %v842_v21  ;;  %v1114_v13 = vmul.f32 %v2344_v7, %v1078_v46  ;;  %v912_v47 = vmul.f32 %v2330_v50, %v1178_v35  ;;  %v1014_v60 = vmul.f32 %v2359_v33, %v978_v51 }
  0xeb   : > { %v1246_v57 = vadd.f32 %v1214_v41, %v1145_v43  ;;  %v843_v2 = vadd.f32 %v811_v56, %v742_v22  ;;  %v642_v55 = vadd.f32 %v610_v54, %v541_v4  ;;  %v1215_v29 = vmul.f32 %v2347_v8, %v1179_v10 }
  0xec   : > { %v1045_v1 = vadd.f32 %v1013_v23, %v943_v53  ;;  %v812_v5 = vmul.f32 %v2325_v30, %v1078_v46  ;;  %v1115_v6 = vmul.f32 %v2344_v7, %v1079_v63  ;;  %v913_v11 = vmul.f32 %v2330_v50, %v1179_v10 }
  0xed   : > { %1278 = vst.msk [vmem:[%s2079_s17 + $0xe0] sm:$0xff] %vm201_vm0, %v1246_v57  ;;  %v944_v38 = vadd.f32 %v912_v47, %v843_v2  ;;  %v743_v25 = vadd.f32 %v711_v59, %v642_v55  ;;  %v1015_v27 = vmul.f32 %v2359_v33, %v979_v34  ;;  %v1216_v30 = vmul.f32 %v2347_v8, %v1180_v9 }
  0xee   : > { %v1146_v45 = vadd.f32 %v1114_v13, %v1045_v1  ;;  %v1116_v50 = vmul.f32 %v2344_v7, %v1080_v12  ;;  %v1217_v35 = vmul.f32 %v2347_v8, %v1181_v48 }
  0xef   : > { %v1046_v17 = vadd.f32 %v1014_v60, %v944_v38  ;;  %v844_v62 = vadd.f32 %v812_v5, %v743_v25 }
  0xf0   : > { %v1247_v14 = vadd.f32 %v1215_v29, %v1146_v45 }
  0xf1   : > { %v1147_v61 = vadd.f32 %v1115_v6, %v1046_v17  ;;  %v945_v20 = vadd.f32 %v913_v11, %v844_v62 }
  0xf2   : > { %1279 = vst.msk [vmem:[%s2079_s17 + $0xe8] sm:$0xff] %vm201_vm0, %v1247_v14 }
  0xf3   : > { %v1248_v16 = vadd.f32 %v1216_v30, %v1147_v61  ;;  %v1047_v3 = vadd.f32 %v1015_v27, %v945_v20 }
  0xf5   : > { %1280 = vst.msk [vmem:[%s2079_s17 + $0xf0] sm:$0xff] %vm201_vm0, %v1248_v16  ;;  %v1148_v33 = vadd.f32 %v1116_v50, %v1047_v3 }
  0xf7   : > { %v1249_v58 = vadd.f32 %v1217_v35, %v1148_v33 }
  0xf9   : > { %1281 = vst.msk [vmem:[%s2079_s17 + $0xf8] sm:$0xff] %vm201_vm0, %v1249_v58 }
  0xfa   : > { %1576 = shalt.err (!%p1573_p5)
}
  0xfb   : > { %s1577_s6 = scalar_lea.hbm %s2432_s24, 4096  ;;  %s1581_s4 = scalar_lea.hbm %s2486_s2, 8192 }
  0xfc   : > { %p1578_p7 = scmp.ne.s32.totalorder %s2432_s24, %s1577_s6  ;;  %p1582_p9 = scmp.lt.s32.totalorder %s2432_s24, %s2486_s2 }
  0xfd   : > { %p1583_p11 = scmp.lt.s32.totalorder %s1581_s4, %s1577_s6 }
  0xfe   : > { %p1579_p4 = pnand %p1578_p7, %p1762_p13 }
  0xff   : > { %p1584_p10 = por %p1583_p11, %p1582_p9 }
 0x100   : > { %p1580_p6 = pneg %p1579_p4 }
 0x102   : > { %p1585_p1 = pnand %p1584_p10, %p1580_p6 }
 0x104   : > { %1588 = shalt.err (!%p1585_p1)
}
 0x105   : > { %s1655_s22 = smov 128   ;;  %s1656_s17 = smov 8  }
 0x106   : > { %1428 = dma.vmem_to_hbm [thread:$0]  (%p1762_p13), %s2434_s21, 4096, %s2432_s24, %s1283_s12, %s1655_s22, %s1655_s22, %s1656_s17  }
 0x107 PF: > { %s1312_s19 = sand.u32 1, %s1627_s9   ;;  %p2500_p8 = scmp.ne.s32.totalorder %s2492_s20, 0 }
 0x108   : > { %p2501_p12 = scmp.ge.s32.totalorder %s1647_s14, 2  ;;  %s1313_s28 = scalar_lea.sflag [#allocation5], %s1312_s19 }
 0x10a   : > { %p1439_p0 = pnand %p2501_p12, %p2500_p8 }
 0x10c   : > { %p1440_p2 = pneg %p1439_p0 }
 0x10e   : > { %1622 = dma.done.wait (%p1440_p2), %s1313_s28, 4096  }
 0x10f   : > { %1624 = vsyncadd (%p1440_p2), %s1313_s28, 4294963200  ;;  %s19_s14 = sadd.s32 1, %s1647_s14   ;;  %s2502_s9 = smov %s1631_s10 }
 0x110   : > { %p16_p3 = scmp.ge.s32.totalorder %s19_s14, 4   ;;  %s2503_s10 = smov %s1635_s11 }
 0x111   : > { %s2504_s11 = smov %s1771_s15  ;;  %s2505_s12 = smov %s1643_s13 }
 0x112   : > { %s2506_s13 = smov %s2508_s25  ;;  %18 = sbr.rel (!%p16_p3) target bundleno = 7 (0x7), region = 80 }
 0x117   :  { %1318 = vsyncpa [#allocation4], 1 }
 0x118   :  { %1320 = vsyncpa [#allocation4 + $0x1], 1 }
 0x119   :  { %1321 = vsyncpa [#allocation7], 1 }
 0x11a   :  { %1322 = vsyncpa [#allocation5], 1 }
 0x11b   :  { %1324 = vsyncpa [#allocation5 + $0x1], 1 }

</bundles_post_ra>
